<compile_context>
chip_gen: v6e
topology: v6e:2x2x1
jax: 0.10.0
libtpu: 0.0.40
codegen_flags: <defaults>
</compile_context>

<pallas_src>
import functools

import jax
import jax.numpy as jnp
from jax.experimental import pallas as pl
from jax.experimental.pallas import tpu as pltpu

LANE = 128


def _round_up(x, m):
    return ((x + m - 1) // m) * m


# --------------------------------------------------------------------------- #
# Fused per-scale discriminator kernel (one grid step == one batch sample)     #
# --------------------------------------------------------------------------- #
def _disc_scale_kernel(*refs, block_flags, K, neg_slope=0.2, eps=1e-5):
    """Inputs (in order):
         xp                       (1, M0, PADK)  im2col patches of the image
         per block i:
           w   i==0: (PADK, C0)   im2col-flattened, zero padded
               i>0 : (K*K, Cin_i, Cout_i)
           b                      (1, Cout_i)
           gamma, beta  (if norm) (1, Cout_i)
           sel          (if i>0)  (K*K, Mo_i, Pin_i)  0/1 patch-gather matrices
           pool_mat     (if pool) (Pout_i, Mo_i)      0.25 avg-pool matrix
         wp                       (1, C_last)    1x1 prediction conv weight
         bp                       (1, 1)
       Outputs:
         fm_i                     (1, Pout_i, Cout_i)
         pred                     (1, Mo_last, 1)
    """
    nb = len(block_flags)

    # ---- unpack refs (order must match the wrapper's `add` calls) ----------
    idx = 0
    xp_ref = refs[idx]; idx += 1
    blocks = []
    for i, (use_norm, use_pool) in enumerate(block_flags):
        w_ref = refs[idx]; b_ref = refs[idx + 1]; idx += 2
        g_ref = bt_ref = None
        if use_norm:
            g_ref = refs[idx]; bt_ref = refs[idx + 1]; idx += 2
        sel_ref = None
        if i > 0:
            sel_ref = refs[idx]; idx += 1
        pm_ref = None
        if use_pool:
            pm_ref = refs[idx]; idx += 1
        blocks.append((w_ref, b_ref, g_ref, bt_ref, sel_ref, pm_ref))
    wp_ref = refs[idx]; bp_ref = refs[idx + 1]; idx += 2
    fm_refs = refs[idx: idx + nb]
    pred_ref = refs[idx + nb]

    bf16 = jnp.bfloat16
    cur = None   # (P_prev, C_prev) f32 output of the previous block (spatial-major)

    for i, (use_norm, use_pool) in enumerate(block_flags):
        w_ref, b_ref, g_ref, bt_ref, sel_ref, pm_ref = blocks[i]

        if i == 0:
            # single im2col matmul: (M0, PADK) @ (PADK, C0), bf16 -> f32 acc
            x = xp_ref[0]
            y = jnp.dot(x.astype(bf16), w_ref[...].astype(bf16),
                        preferred_element_type=jnp.float32)
        else:
            kk = K * K
            m_out = sel_ref.shape[1]
            c_out = w_ref.shape[2]
            y = jnp.zeros((m_out, c_out), jnp.float32)
            for t in range(kk):
                # exact 0/1 gather of the t-th tap (f32), then bf16 MXU matmul
                patch = jnp.dot(sel_ref[t], cur,
                                preferred_element_type=jnp.float32)
                y = y + jnp.dot(patch.astype(bf16), w_ref[t].astype(bf16),
                                preferred_element_type=jnp.float32)
        y = y + b_ref[...]

        if use_norm:
            # InstanceNorm2d(affine=True): biased variance over spatial, eps=1e-5,
            # centered (two-pass) variance -> never negative.
            mean = jnp.mean(y, axis=0, keepdims=True)
            d = y - mean
            var = jnp.mean(d * d, axis=0, keepdims=True)
            y = d * jax.lax.rsqrt(var + eps) * g_ref[...] + bt_ref[...]

        # LeakyReLU(0.2)
        y = jnp.where(y > 0, y, neg_slope * y)

        if use_pool:
            # AvgPool2d(2, 2) (floor mode) as one matmul with a 0.25 pooling matrix
            y = jnp.dot(pm_ref[...], y, preferred_element_type=jnp.float32)

        fm_refs[i][0] = y.astype(fm_refs[i].dtype)
        cur = y

    # 1x1 prediction conv == channel-wise dot + bias
    p = jnp.sum(cur * wp_ref[...], axis=-1, keepdims=True) + bp_ref[...]
    pred_ref[0] = p.astype(pred_ref.dtype)


# --------------------------------------------------------------------------- #
# Wrapper-side layout plumbing (im2col / pooling / gather constants)           #
# --------------------------------------------------------------------------- #
def _im2col(x_nhwc, k):
    B, H, W, C = x_nhwc.shape
    ho, wo = H - k + 1, W - k + 1
    cols = []
    for kh in range(k):
        for kw in range(k):
            cols.append(x_nhwc[:, kh:kh + ho, kw:kw + wo, :])
    p = jnp.concatenate(cols, axis=-1)              # (B, ho, wo, k*k*C)
    return p.reshape(B, ho * wo, k * k * C)


def _pool_matrix(ho, wo):
    hp, wp = ho // 2, wo // 2
    pi = jnp.arange(hp * wp)
    ph, pw = pi // wp, pi % wp
    qi = jnp.arange(ho * wo)
    qh, qw = qi // wo, qi % wo
    m = (qh[None, :] // 2 == ph[:, None]) & (qw[None, :] // 2 == pw[:, None])
    return jnp.where(m, 0.25, 0.0).astype(jnp.float32)          # (hp*wp, ho*wo)


def _gather_matrices(hin, win, k):
    ho, wo = hin - k + 1, win - k + 1
    oi = jnp.arange(ho * wo)
    oh, ow = oi // wo, oi % wo
    qi = jnp.arange(hin * win)
    qh, qw = qi // win, qi % win
    sels = []
    for kh in range(k):
        for kw in range(k):
            m = (qh[None, :] == oh[:, None] + kh) & (qw[None, :] == ow[:, None] + kw)
            sels.append(m.astype(jnp.float32))
    return jnp.stack(sels, axis=0)                  # (k*k, ho*wo, hin*win)


# --------------------------------------------------------------------------- #
# Per-scale Discriminator forward (single fused pallas_call)                   #
# --------------------------------------------------------------------------- #
@functools.partial(jax.jit, static_argnames=("kernel_size", "num_blocks"))
def discriminator_forward(x_nchw, params, *, kernel_size=3, num_blocks=2):
    # TODO(synk): kp gaussian-heatmap concat (use_kp) and spectral_norm are not
    # implemented (inference path with kp=None only).
    B, Cin, H, W = x_nchw.shape
    K = kernel_size
    x = jnp.transpose(x_nchw, (0, 2, 3, 1)).astype(jnp.float32)     # NHWC

    # ---- static per-block geometry / flags
    blocks_cfg = []          # (use_norm, use_pool, cin, cout, ho, wo, pho, pwo)
    h, w, cin = H, W, Cin
    for i in range(num_blocks):
        cout = params['blocks'][i]['w'].shape[-1]
        use_norm = (i != 0)
        use_pool = (i != num_blocks - 1)
        ho, wo = h - K + 1, w - K + 1
        pho, pwo = (ho // 2, wo // 2) if use_pool else (ho, wo)
        blocks_cfg.append((use_norm, use_pool, cin, cout, ho, wo, pho, pwo))
        h, w, cin = pho, pwo, cout

    # ---- assemble kernel inputs + BlockSpecs (order must match kernel unpack)
    inputs, in_specs = [], []

    def add(arr, batched=False):
        nd = arr.ndim
        inputs.append(arr)
        if batched:
            in_specs.append(pl.BlockSpec(
                (1,) + arr.shape[1:],
                lambda b, _n=nd: (b,) + (0,) * (_n - 1)))
        else:
            in_specs.append(pl.BlockSpec(
                arr.shape, lambda b, _n=nd: (0,) * _n))

    # im2col patches for conv0, lane-padded to 128
    kkc0 = K * K * Cin
    padk = _round_up(kkc0, LANE)
    xp = _im2col(x, K)                                          # (B, M0, kkc0)
    xp = jnp.pad(xp, ((0, 0), (0, 0), (0, padk - kkc0)))
    add(xp, batched=True)

    prev_h, prev_w = H, W
    for i, (use_norm, use_pool, cin_i, cout_i, ho, wo, pho, pwo) in enumerate(blocks_cfg):
        p = params['blocks'][i]
        if i == 0:
            w0 = p['w'].reshape(K * K * cin_i, cout_i)
            w0 = jnp.pad(w0, ((0, padk - K * K * cin_i), (0, 0)))
            add(w0)                                             # (PADK, C0)
        else:
            add(p['w'])                                         # (K*K, cin, cout)
        add(p['b'])
        if use_norm:
            add(p['gamma']); add(p['beta'])
        if i > 0:
            add(_gather_matrices(prev_h, prev_w, K))            # (K*K, ho*wo, prev)
        if use_pool:
            add(_pool_matrix(ho, wo))                           # (pho*pwo, ho*wo)
        prev_h, prev_w = pho, pwo

    add(params['pred']['w'])                                    # (1, C_last)
    add(params['pred']['b'])                                    # (1, 1)

    # ---- outputs
    out_shapes, out_specs = [], []
    for (_, _, _, cout_i, _, _, pho, pwo) in blocks_cfg:
        out_shapes.append(jax.ShapeDtypeStruct((B, pho * pwo, cout_i), jnp.float32))
        out_specs.append(pl.BlockSpec((1, pho * pwo, cout_i), lambda b: (b, 0, 0)))
    m_last = blocks_cfg[-1][6] * blocks_cfg[-1][7]
    out_shapes.append(jax.ShapeDtypeStruct((B, m_last, 1), jnp.float32))
    out_specs.append(pl.BlockSpec((1, m_last, 1), lambda b: (b, 0, 0)))

    kernel = functools.partial(
        _disc_scale_kernel,
        block_flags=tuple((c[0], c[1]) for c in blocks_cfg),
        K=K)

    outs = pl.pallas_call(
        kernel,
        out_shape=tuple(out_shapes),
        grid_spec=pltpu.PrefetchScalarGridSpec(
            num_scalar_prefetch=0,
            grid=(B,),
            in_specs=in_specs,
            out_specs=tuple(out_specs),
        ),
        compiler_params=pltpu.CompilerParams(
            dimension_semantics=("parallel",)),
    )(*inputs)

    # ---- NCHW re-layout (tiny arrays; pure layout plumbing in the wrapper)
    feature_maps = []
    for o, (_, _, _, cout_i, _, _, pho, pwo) in zip(outs[:-1], blocks_cfg):
        feature_maps.append(jnp.transpose(o, (0, 2, 1)).reshape(B, cout_i, pho, pwo))
    pho_l, pwo_l = blocks_cfg[-1][6], blocks_cfg[-1][7]
    prediction_map = outs[-1].reshape(B, 1, pho_l, pwo_l)
    return feature_maps, prediction_map


# --------------------------------------------------------------------------- #
# Parameter init (Pix2Pix/FOMM-style Discriminator)                            #
# --------------------------------------------------------------------------- #
def init_discriminator_params(key, num_channels=4, block_expansion=8,
                              num_blocks=2, max_features=32, kernel_size=3):
    params = {'blocks': []}
    in_ch = num_channels
    for i in range(num_blocks):
        out_ch = min(max_features, block_expansion * (2 ** (i + 1)))
        key, kw_, kb, kg, kbt = jax.random.split(key, 5)
        w = 0.1 * jax.random.normal(kw_, (kernel_size, kernel_size, in_ch, out_ch),
                                    jnp.float32)
        b = 0.1 * jax.random.normal(kb, (out_ch,), jnp.float32)
        gamma = 1.0 + 0.1 * jax.random.normal(kg, (out_ch,), jnp.float32)
        beta = 0.1 * jax.random.normal(kbt, (out_ch,), jnp.float32)
        params['blocks'].append({
            'w': w.reshape(kernel_size * kernel_size, in_ch, out_ch),
            'b': b.reshape(1, out_ch),
            'gamma': gamma.reshape(1, out_ch),
            'beta': beta.reshape(1, out_ch),
        })
        in_ch = out_ch
    key, kw_, kb = jax.random.split(key, 3)
    w = 0.1 * jax.random.normal(kw_, (in_ch,), jnp.float32)
    b = 0.1 * jax.random.normal(kb, (1,), jnp.float32)
    params['pred'] = {'w': w.reshape(1, in_ch), 'b': b.reshape(1, 1)}
    return params


# --------------------------------------------------------------------------- #
# MultiScaleDiscriminator                                                       #
# --------------------------------------------------------------------------- #
class MultiScaleDiscriminatorPallas:
    def __init__(self, scales=(), key=None, **kwargs):
        self.scales = scales
        self.kwargs = kwargs
        self.params = {}
        key = jax.random.PRNGKey(0) if key is None else key
        for scale in scales:
            key, sub = jax.random.split(key)
            self.params[str(scale).replace('.', '-')] = init_discriminator_params(
                sub,
                num_channels=kwargs.get('num_channels', 4),
                block_expansion=kwargs.get('block_expansion', 8),
                num_blocks=kwargs.get('num_blocks', 2),
                max_features=kwargs.get('max_features', 32),
                kernel_size=kwargs.get('kernel_size', 3),
            )

    def __call__(self, x: dict, kp=None) -> dict:
        # TODO(synk): kp (gaussian heatmap concat) is ignored — kp=None path only.
        out_dict = {}
        for scale_key, p in self.params.items():
            scale = str(scale_key).replace('-', '.')
            key = f'prediction_{scale}'
            feature_maps, prediction_map = discriminator_forward(
                x[key], p,
                kernel_size=self.kwargs.get('kernel_size', 3),
                num_blocks=self.kwargs.get('num_blocks', 2))
            out_dict[f'feature_maps_{scale}'] = feature_maps
            out_dict[f'prediction_map_{scale}'] = prediction_map
        return out_dict


if __name__ == "__main__":
    key = jax.random.PRNGKey(0)
    kx1, kx2, kparams = jax.random.split(key, 3)
    B, C = 2, 4
    x = {
        'prediction_1': jax.random.normal(kx1, (B, C, 16, 16), jnp.float32),
        'prediction_0.5': jax.random.normal(kx2, (B, C, 8, 8), jnp.float32),
    }

    disc = MultiScaleDiscriminatorPallas(
        scales=(1, 0.5), key=kparams,
        num_channels=C, block_expansion=8, num_blocks=2,
        max_features=32, kernel_size=3)

    out = disc(x)
    out = jax.block_until_ready(out)

    # shapes: scale 1: 16->14->pool 7->5 ; scale 0.5: 8->6->pool 3->1
    assert out['prediction_map_1'].shape == (B, 1, 5, 5)
    assert out['prediction_map_0.5'].shape == (B, 1, 1, 1)
    assert out['feature_maps_1'][0].shape == (B, 16, 7, 7)
    assert out['feature_maps_1'][1].shape == (B, 32, 5, 5)
    assert out['feature_maps_0.5'][0].shape == (B, 16, 3, 3)
    assert out['feature_maps_0.5'][1].shape == (B, 32, 1, 1)

    print("KERNEL_OK")
</pallas_src>

<mosaic_0001>
module attributes {stable_mosaic.version = 11 : i64} {
  func.func @_disc_scale_kernel(%arg0: i32, %arg1: memref<1x196x128xf32, #tpu.memory_space<vmem>>, %arg2: memref<128x16xf32, #tpu.memory_space<vmem>>, %arg3: memref<1x16xf32, #tpu.memory_space<vmem>>, %arg4: memref<49x196xf32, #tpu.memory_space<vmem>>, %arg5: memref<9x16x32xf32, #tpu.memory_space<vmem>>, %arg6: memref<1x32xf32, #tpu.memory_space<vmem>>, %arg7: memref<1x32xf32, #tpu.memory_space<vmem>>, %arg8: memref<1x32xf32, #tpu.memory_space<vmem>>, %arg9: memref<9x25x49xf32, #tpu.memory_space<vmem>>, %arg10: memref<1x32xf32, #tpu.memory_space<vmem>>, %arg11: memref<1x1xf32, #tpu.memory_space<vmem>>, %arg12: memref<1x49x16xf32, #tpu.memory_space<vmem>>, %arg13: memref<1x25x32xf32, #tpu.memory_space<vmem>>, %arg14: memref<1x25x1xf32, #tpu.memory_space<vmem>>) attributes {dimension_semantics = [#tpu.dimension_semantics<parallel>], iteration_bounds = array<i64: 2>, scalar_prefetch = 0 : i64, scratch_operands = 0 : i64, tpu.core_type = #tpu.core_type<tc>, window_params = [{transform_indices = @transform_0, window_bounds = array<i64: 1, 196, 128>}, {pipeline_mode = #tpu.pipeline_mode<synchronous>, transform_indices = @transform_1, window_bounds = array<i64: 128, 16>}, {pipeline_mode = #tpu.pipeline_mode<synchronous>, transform_indices = @transform_2, window_bounds = array<i64: 1, 16>}, {pipeline_mode = #tpu.pipeline_mode<synchronous>, transform_indices = @transform_3, window_bounds = array<i64: 49, 196>}, {pipeline_mode = #tpu.pipeline_mode<synchronous>, transform_indices = @transform_4, window_bounds = array<i64: 9, 16, 32>}, {pipeline_mode = #tpu.pipeline_mode<synchronous>, transform_indices = @transform_5, window_bounds = array<i64: 1, 32>}, {pipeline_mode = #tpu.pipeline_mode<synchronous>, transform_indices = @transform_6, window_bounds = array<i64: 1, 32>}, {pipeline_mode = #tpu.pipeline_mode<synchronous>, transform_indices = @transform_7, window_bounds = array<i64: 1, 32>}, {pipeline_mode = #tpu.pipeline_mode<synchronous>, transform_indices = @transform_8, window_bounds = array<i64: 9, 25, 49>}, {pipeline_mode = #tpu.pipeline_mode<synchronous>, transform_indices = @transform_9, window_bounds = array<i64: 1, 32>}, {pipeline_mode = #tpu.pipeline_mode<synchronous>, transform_indices = @transform_10, window_bounds = array<i64: 1, 1>}, {transform_indices = @transform_11, window_bounds = array<i64: 1, 49, 16>}, {transform_indices = @transform_12, window_bounds = array<i64: 1, 25, 32>}, {transform_indices = @transform_13, window_bounds = array<i64: 1, 25, 1>}]} {
    %c0 = arith.constant 0 : index
    %c0_0 = arith.constant 0 : index
    %c0_1 = arith.constant 0 : index
    %0 = vector.load %arg1[%c0, %c0_0, %c0_1] : memref<1x196x128xf32, #tpu.memory_space<vmem>>, vector<1x196x128xf32>
    %1 = vector.shape_cast %0 : vector<1x196x128xf32> to vector<196x128xf32>
    %2 = arith.truncf %1 : vector<196x128xf32> to vector<196x128xbf16>
    %c0_2 = arith.constant 0 : index
    %c0_3 = arith.constant 0 : index
    %3 = vector.load %arg2[%c0_2, %c0_3] : memref<128x16xf32, #tpu.memory_space<vmem>>, vector<128x16xf32>
    %4 = arith.truncf %3 : vector<128x16xf32> to vector<128x16xbf16>
    %cst = arith.constant dense<0.000000e+00> : vector<196x16xf32>
    %5 = tpu.matmul %2, %4, %cst {dimension_numbers = #tpu.dot_dimension_numbers<[1], [0], [0], [1], [0, 0, 1, 1], [], []>} : vector<196x128xbf16>, vector<128x16xbf16>, vector<196x16xf32> -> vector<196x16xf32>
    %c0_4 = arith.constant 0 : index
    %c0_5 = arith.constant 0 : index
    %6 = vector.load %arg3[%c0_4, %c0_5] : memref<1x16xf32, #tpu.memory_space<vmem>>, vector<1x16xf32>
    %7 = vector.broadcast %6 : vector<1x16xf32> to vector<196x16xf32>
    %8 = arith.addf %5, %7 : vector<196x16xf32>
    %cst_6 = arith.constant 0.000000e+00 : f32
    %9 = vector.broadcast %cst_6 : f32 to vector<196x16xf32>
    %10 = arith.cmpf ogt, %8, %9 : vector<196x16xf32>
    %cst_7 = arith.constant 2.000000e-01 : f32
    %11 = vector.broadcast %cst_7 : f32 to vector<196x16xf32>
    %12 = arith.mulf %11, %8 : vector<196x16xf32>
    %13 = arith.select %10, %8, %12 : vector<196x16xi1>, vector<196x16xf32>
    %c0_8 = arith.constant 0 : index
    %c0_9 = arith.constant 0 : index
    %14 = vector.load %arg4[%c0_8, %c0_9] : memref<49x196xf32, #tpu.memory_space<vmem>>, vector<49x196xf32>
    %cst_10 = arith.constant dense<0.000000e+00> : vector<49x16xf32>
    %15 = tpu.matmul %14, %13, %cst_10 {dimension_numbers = #tpu.dot_dimension_numbers<[1], [0], [0], [1], [0, 0, 1, 1], [], []>} : vector<49x196xf32>, vector<196x16xf32>, vector<49x16xf32> -> vector<49x16xf32>
    %c0_11 = arith.constant 0 : index
    %c0_12 = arith.constant 0 : index
    %c0_13 = arith.constant 0 : index
    %16 = vector.load %arg12[%c0_11, %c0_12, %c0_13] : memref<1x49x16xf32, #tpu.memory_space<vmem>>, vector<1x49x16xf32>
    %17 = vector.shape_cast %16 : vector<1x49x16xf32> to vector<49x16xf32>
    %18 = vector.shape_cast %15 : vector<49x16xf32> to vector<1x49x16xf32>
    tpu.vector_store %arg12[%c0_11, %c0_12, %c0_13], %18 {strides = array<i32>} : memref<1x49x16xf32, #tpu.memory_space<vmem>>, vector<1x49x16xf32>,
    %cst_14 = arith.constant 0.000000e+00 : f32
    %19 = vector.broadcast %cst_14 : f32 to vector<25x32xf32>
    %c0_15 = arith.constant 0 : index
    %c0_16 = arith.constant 0 : index
    %c0_17 = arith.constant 0 : index
    %20 = vector.load %arg9[%c0_15, %c0_16, %c0_17] : memref<9x25x49xf32, #tpu.memory_space<vmem>>, vector<1x25x49xf32>
    %21 = vector.shape_cast %20 : vector<1x25x49xf32> to vector<25x49xf32>
    %cst_18 = arith.constant dense<0.000000e+00> : vector<25x16xf32>
    %22 = tpu.matmul %21, %15, %cst_18 {dimension_numbers = #tpu.dot_dimension_numbers<[1], [0], [0], [1], [0, 0, 1, 1], [], []>} : vector<25x49xf32>, vector<49x16xf32>, vector<25x16xf32> -> vector<25x16xf32>
    %23 = arith.truncf %22 : vector<25x16xf32> to vector<25x16xbf16>
    %c0_19 = arith.constant 0 : index
    %c0_20 = arith.constant 0 : index
    %c0_21 = arith.constant 0 : index
    %24 = vector.load %arg5[%c0_19, %c0_20, %c0_21] : memref<9x16x32xf32, #tpu.memory_space<vmem>>, vector<1x16x32xf32>
    %25 = vector.shape_cast %24 : vector<1x16x32xf32> to vector<16x32xf32>
    %26 = arith.truncf %25 : vector<16x32xf32> to vector<16x32xbf16>
    %cst_22 = arith.constant dense<0.000000e+00> : vector<25x32xf32>
    %27 = tpu.matmul %23, %26, %cst_22 {dimension_numbers = #tpu.dot_dimension_numbers<[1], [0], [0], [1], [0, 0, 1, 1], [], []>} : vector<25x16xbf16>, vector<16x32xbf16>, vector<25x32xf32> -> vector<25x32xf32>
    %28 = arith.addf %19, %27 : vector<25x32xf32>
    %c1 = arith.constant 1 : index
    %c0_23 = arith.constant 0 : index
    %c0_24 = arith.constant 0 : index
    %29 = vector.load %arg9[%c1, %c0_23, %c0_24] : memref<9x25x49xf32, #tpu.memory_space<vmem>>, vector<1x25x49xf32>
    %30 = vector.shape_cast %29 : vector<1x25x49xf32> to vector<25x49xf32>
    %cst_25 = arith.constant dense<0.000000e+00> : vector<25x16xf32>
    %31 = tpu.matmul %30, %15, %cst_25 {dimension_numbers = #tpu.dot_dimension_numbers<[1], [0], [0], [1], [0, 0, 1, 1], [], []>} : vector<25x49xf32>, vector<49x16xf32>, vector<25x16xf32> -> vector<25x16xf32>
    %32 = arith.truncf %31 : vector<25x16xf32> to vector<25x16xbf16>
    %c1_26 = arith.constant 1 : index
    %c0_27 = arith.constant 0 : index
    %c0_28 = arith.constant 0 : index
    %33 = vector.load %arg5[%c1_26, %c0_27, %c0_28] : memref<9x16x32xf32, #tpu.memory_space<vmem>>, vector<1x16x32xf32>
    %34 = vector.shape_cast %33 : vector<1x16x32xf32> to vector<16x32xf32>
    %35 = arith.truncf %34 : vector<16x32xf32> to vector<16x32xbf16>
    %cst_29 = arith.constant dense<0.000000e+00> : vector<25x32xf32>
    %36 = tpu.matmul %32, %35, %cst_29 {dimension_numbers = #tpu.dot_dimension_numbers<[1], [0], [0], [1], [0, 0, 1, 1], [], []>} : vector<25x16xbf16>, vector<16x32xbf16>, vector<25x32xf32> -> vector<25x32xf32>
    %37 = arith.addf %28, %36 : vector<25x32xf32>
    %c2 = arith.constant 2 : index
    %c0_30 = arith.constant 0 : index
    %c0_31 = arith.constant 0 : index
    %38 = vector.load %arg9[%c2, %c0_30, %c0_31] : memref<9x25x49xf32, #tpu.memory_space<vmem>>, vector<1x25x49xf32>
    %39 = vector.shape_cast %38 : vector<1x25x49xf32> to vector<25x49xf32>
    %cst_32 = arith.constant dense<0.000000e+00> : vector<25x16xf32>
    %40 = tpu.matmul %39, %15, %cst_32 {dimension_numbers = #tpu.dot_dimension_numbers<[1], [0], [0], [1], [0, 0, 1, 1], [], []>} : vector<25x49xf32>, vector<49x16xf32>, vector<25x16xf32> -> vector<25x16xf32>
    %41 = arith.truncf %40 : vector<25x16xf32> to vector<25x16xbf16>
    %c2_33 = arith.constant 2 : index
    %c0_34 = arith.constant 0 : index
    %c0_35 = arith.constant 0 : index
    %42 = vector.load %arg5[%c2_33, %c0_34, %c0_35] : memref<9x16x32xf32, #tpu.memory_space<vmem>>, vector<1x16x32xf32>
    %43 = vector.shape_cast %42 : vector<1x16x32xf32> to vector<16x32xf32>
    %44 = arith.truncf %43 : vector<16x32xf32> to vector<16x32xbf16>
    %cst_36 = arith.constant dense<0.000000e+00> : vector<25x32xf32>
    %45 = tpu.matmul %41, %44, %cst_36 {dimension_numbers = #tpu.dot_dimension_numbers<[1], [0], [0], [1], [0, 0, 1, 1], [], []>} : vector<25x16xbf16>, vector<16x32xbf16>, vector<25x32xf32> -> vector<25x32xf32>
    %46 = arith.addf %37, %45 : vector<25x32xf32>
    %c3 = arith.constant 3 : index
    %c0_37 = arith.constant 0 : index
    %c0_38 = arith.constant 0 : index
    %47 = vector.load %arg9[%c3, %c0_37, %c0_38] : memref<9x25x49xf32, #tpu.memory_space<vmem>>, vector<1x25x49xf32>
    %48 = vector.shape_cast %47 : vector<1x25x49xf32> to vector<25x49xf32>
    %cst_39 = arith.constant dense<0.000000e+00> : vector<25x16xf32>
    %49 = tpu.matmul %48, %15, %cst_39 {dimension_numbers = #tpu.dot_dimension_numbers<[1], [0], [0], [1], [0, 0, 1, 1], [], []>} : vector<25x49xf32>, vector<49x16xf32>, vector<25x16xf32> -> vector<25x16xf32>
    %50 = arith.truncf %49 : vector<25x16xf32> to vector<25x16xbf16>
    %c3_40 = arith.constant 3 : index
    %c0_41 = arith.constant 0 : index
    %c0_42 = arith.constant 0 : index
    %51 = vector.load %arg5[%c3_40, %c0_41, %c0_42] : memref<9x16x32xf32, #tpu.memory_space<vmem>>, vector<1x16x32xf32>
    %52 = vector.shape_cast %51 : vector<1x16x32xf32> to vector<16x32xf32>
    %53 = arith.truncf %52 : vector<16x32xf32> to vector<16x32xbf16>
    %cst_43 = arith.constant dense<0.000000e+00> : vector<25x32xf32>
    %54 = tpu.matmul %50, %53, %cst_43 {dimension_numbers = #tpu.dot_dimension_numbers<[1], [0], [0], [1], [0, 0, 1, 1], [], []>} : vector<25x16xbf16>, vector<16x32xbf16>, vector<25x32xf32> -> vector<25x32xf32>
    %55 = arith.addf %46, %54 : vector<25x32xf32>
    %c4 = arith.constant 4 : index
    %c0_44 = arith.constant 0 : index
    %c0_45 = arith.constant 0 : index
    %56 = vector.load %arg9[%c4, %c0_44, %c0_45] : memref<9x25x49xf32, #tpu.memory_space<vmem>>, vector<1x25x49xf32>
    %57 = vector.shape_cast %56 : vector<1x25x49xf32> to vector<25x49xf32>
    %cst_46 = arith.constant dense<0.000000e+00> : vector<25x16xf32>
    %58 = tpu.matmul %57, %15, %cst_46 {dimension_numbers = #tpu.dot_dimension_numbers<[1], [0], [0], [1], [0, 0, 1, 1], [], []>} : vector<25x49xf32>, vector<49x16xf32>, vector<25x16xf32> -> vector<25x16xf32>
    %59 = arith.truncf %58 : vector<25x16xf32> to vector<25x16xbf16>
    %c4_47 = arith.constant 4 : index
    %c0_48 = arith.constant 0 : index
    %c0_49 = arith.constant 0 : index
    %60 = vector.load %arg5[%c4_47, %c0_48, %c0_49] : memref<9x16x32xf32, #tpu.memory_space<vmem>>, vector<1x16x32xf32>
    %61 = vector.shape_cast %60 : vector<1x16x32xf32> to vector<16x32xf32>
    %62 = arith.truncf %61 : vector<16x32xf32> to vector<16x32xbf16>
    %cst_50 = arith.constant dense<0.000000e+00> : vector<25x32xf32>
    %63 = tpu.matmul %59, %62, %cst_50 {dimension_numbers = #tpu.dot_dimension_numbers<[1], [0], [0], [1], [0, 0, 1, 1], [], []>} : vector<25x16xbf16>, vector<16x32xbf16>, vector<25x32xf32> -> vector<25x32xf32>
    %64 = arith.addf %55, %63 : vector<25x32xf32>
    %c5 = arith.constant 5 : index
    %c0_51 = arith.constant 0 : index
    %c0_52 = arith.constant 0 : index
    %65 = vector.load %arg9[%c5, %c0_51, %c0_52] : memref<9x25x49xf32, #tpu.memory_space<vmem>>, vector<1x25x49xf32>
    %66 = vector.shape_cast %65 : vector<1x25x49xf32> to vector<25x49xf32>
    %cst_53 = arith.constant dense<0.000000e+00> : vector<25x16xf32>
    %67 = tpu.matmul %66, %15, %cst_53 {dimension_numbers = #tpu.dot_dimension_numbers<[1], [0], [0], [1], [0, 0, 1, 1], [], []>} : vector<25x49xf32>, vector<49x16xf32>, vector<25x16xf32> -> vector<25x16xf32>
    %68 = arith.truncf %67 : vector<25x16xf32> to vector<25x16xbf16>
    %c5_54 = arith.constant 5 : index
    %c0_55 = arith.constant 0 : index
    %c0_56 = arith.constant 0 : index
    %69 = vector.load %arg5[%c5_54, %c0_55, %c0_56] : memref<9x16x32xf32, #tpu.memory_space<vmem>>, vector<1x16x32xf32>
    %70 = vector.shape_cast %69 : vector<1x16x32xf32> to vector<16x32xf32>
    %71 = arith.truncf %70 : vector<16x32xf32> to vector<16x32xbf16>
    %cst_57 = arith.constant dense<0.000000e+00> : vector<25x32xf32>
    %72 = tpu.matmul %68, %71, %cst_57 {dimension_numbers = #tpu.dot_dimension_numbers<[1], [0], [0], [1], [0, 0, 1, 1], [], []>} : vector<25x16xbf16>, vector<16x32xbf16>, vector<25x32xf32> -> vector<25x32xf32>
    %73 = arith.addf %64, %72 : vector<25x32xf32>
    %c6 = arith.constant 6 : index
    %c0_58 = arith.constant 0 : index
    %c0_59 = arith.constant 0 : index
    %74 = vector.load %arg9[%c6, %c0_58, %c0_59] : memref<9x25x49xf32, #tpu.memory_space<vmem>>, vector<1x25x49xf32>
    %75 = vector.shape_cast %74 : vector<1x25x49xf32> to vector<25x49xf32>
    %cst_60 = arith.constant dense<0.000000e+00> : vector<25x16xf32>
    %76 = tpu.matmul %75, %15, %cst_60 {dimension_numbers = #tpu.dot_dimension_numbers<[1], [0], [0], [1], [0, 0, 1, 1], [], []>} : vector<25x49xf32>, vector<49x16xf32>, vector<25x16xf32> -> vector<25x16xf32>
    %77 = arith.truncf %76 : vector<25x16xf32> to vector<25x16xbf16>
    %c6_61 = arith.constant 6 : index
    %c0_62 = arith.constant 0 : index
    %c0_63 = arith.constant 0 : index
    %78 = vector.load %arg5[%c6_61, %c0_62, %c0_63] : memref<9x16x32xf32, #tpu.memory_space<vmem>>, vector<1x16x32xf32>
    %79 = vector.shape_cast %78 : vector<1x16x32xf32> to vector<16x32xf32>
    %80 = arith.truncf %79 : vector<16x32xf32> to vector<16x32xbf16>
    %cst_64 = arith.constant dense<0.000000e+00> : vector<25x32xf32>
    %81 = tpu.matmul %77, %80, %cst_64 {dimension_numbers = #tpu.dot_dimension_numbers<[1], [0], [0], [1], [0, 0, 1, 1], [], []>} : vector<25x16xbf16>, vector<16x32xbf16>, vector<25x32xf32> -> vector<25x32xf32>
    %82 = arith.addf %73, %81 : vector<25x32xf32>
    %c7 = arith.constant 7 : index
    %c0_65 = arith.constant 0 : index
    %c0_66 = arith.constant 0 : index
    %83 = vector.load %arg9[%c7, %c0_65, %c0_66] : memref<9x25x49xf32, #tpu.memory_space<vmem>>, vector<1x25x49xf32>
    %84 = vector.shape_cast %83 : vector<1x25x49xf32> to vector<25x49xf32>
    %cst_67 = arith.constant dense<0.000000e+00> : vector<25x16xf32>
    %85 = tpu.matmul %84, %15, %cst_67 {dimension_numbers = #tpu.dot_dimension_numbers<[1], [0], [0], [1], [0, 0, 1, 1], [], []>} : vector<25x49xf32>, vector<49x16xf32>, vector<25x16xf32> -> vector<25x16xf32>
    %86 = arith.truncf %85 : vector<25x16xf32> to vector<25x16xbf16>
    %c7_68 = arith.constant 7 : index
    %c0_69 = arith.constant 0 : index
    %c0_70 = arith.constant 0 : index
    %87 = vector.load %arg5[%c7_68, %c0_69, %c0_70] : memref<9x16x32xf32, #tpu.memory_space<vmem>>, vector<1x16x32xf32>
    %88 = vector.shape_cast %87 : vector<1x16x32xf32> to vector<16x32xf32>
    %89 = arith.truncf %88 : vector<16x32xf32> to vector<16x32xbf16>
    %cst_71 = arith.constant dense<0.000000e+00> : vector<25x32xf32>
    %90 = tpu.matmul %86, %89, %cst_71 {dimension_numbers = #tpu.dot_dimension_numbers<[1], [0], [0], [1], [0, 0, 1, 1], [], []>} : vector<25x16xbf16>, vector<16x32xbf16>, vector<25x32xf32> -> vector<25x32xf32>
    %91 = arith.addf %82, %90 : vector<25x32xf32>
    %c8 = arith.constant 8 : index
    %c0_72 = arith.constant 0 : index
    %c0_73 = arith.constant 0 : index
    %92 = vector.load %arg9[%c8, %c0_72, %c0_73] : memref<9x25x49xf32, #tpu.memory_space<vmem>>, vector<1x25x49xf32>
    %93 = vector.shape_cast %92 : vector<1x25x49xf32> to vector<25x49xf32>
    %cst_74 = arith.constant dense<0.000000e+00> : vector<25x16xf32>
    %94 = tpu.matmul %93, %15, %cst_74 {dimension_numbers = #tpu.dot_dimension_numbers<[1], [0], [0], [1], [0, 0, 1, 1], [], []>} : vector<25x49xf32>, vector<49x16xf32>, vector<25x16xf32> -> vector<25x16xf32>
    %95 = arith.truncf %94 : vector<25x16xf32> to vector<25x16xbf16>
    %c8_75 = arith.constant 8 : index
    %c0_76 = arith.constant 0 : index
    %c0_77 = arith.constant 0 : index
    %96 = vector.load %arg5[%c8_75, %c0_76, %c0_77] : memref<9x16x32xf32, #tpu.memory_space<vmem>>, vector<1x16x32xf32>
    %97 = vector.shape_cast %96 : vector<1x16x32xf32> to vector<16x32xf32>
    %98 = arith.truncf %97 : vector<16x32xf32> to vector<16x32xbf16>
    %cst_78 = arith.constant dense<0.000000e+00> : vector<25x32xf32>
    %99 = tpu.matmul %95, %98, %cst_78 {dimension_numbers = #tpu.dot_dimension_numbers<[1], [0], [0], [1], [0, 0, 1, 1], [], []>} : vector<25x16xbf16>, vector<16x32xbf16>, vector<25x32xf32> -> vector<25x32xf32>
    %100 = arith.addf %91, %99 : vector<25x32xf32>
    %c0_79 = arith.constant 0 : index
    %c0_80 = arith.constant 0 : index
    %101 = vector.load %arg6[%c0_79, %c0_80] : memref<1x32xf32, #tpu.memory_space<vmem>>, vector<1x32xf32>
    %102 = vector.broadcast %101 : vector<1x32xf32> to vector<25x32xf32>
    %103 = arith.addf %100, %102 : vector<25x32xf32>
    %cst_81 = arith.constant dense<0.000000e+00> : vector<32xf32>
    %104 = vector.multi_reduction <add>, %103, %cst_81 [0] : vector<25x32xf32> to vector<32xf32>
    %105 = vector.shape_cast %104 : vector<32xf32> to vector<1x32xf32>
    %cst_82 = arith.constant 2.500000e+01 : f32
    %106 = vector.broadcast %cst_82 : f32 to vector<1x32xf32>
    %107 = arith.divf %105, %106 : vector<1x32xf32>
    %108 = vector.broadcast %107 : vector<1x32xf32> to vector<25x32xf32>
    %109 = arith.subf %103, %108 : vector<25x32xf32>
    %110 = arith.mulf %109, %109 : vector<25x32xf32>
    %cst_83 = arith.constant dense<0.000000e+00> : vector<32xf32>
    %111 = vector.multi_reduction <add>, %110, %cst_83 [0] : vector<25x32xf32> to vector<32xf32>
    %112 = vector.shape_cast %111 : vector<32xf32> to vector<1x32xf32>
    %cst_84 = arith.constant 2.500000e+01 : f32
    %113 = vector.broadcast %cst_84 : f32 to vector<1x32xf32>
    %114 = arith.divf %112, %113 : vector<1x32xf32>
    %cst_85 = arith.constant 9.99999974E-6 : f32
    %115 = vector.broadcast %cst_85 : f32 to vector<1x32xf32>
    %116 = arith.addf %114, %115 : vector<1x32xf32>
    %117 = math.rsqrt %116 : vector<1x32xf32>
    %118 = vector.broadcast %117 : vector<1x32xf32> to vector<25x32xf32>
    %119 = arith.mulf %109, %118 : vector<25x32xf32>
    %c0_86 = arith.constant 0 : index
    %c0_87 = arith.constant 0 : index
    %120 = vector.load %arg7[%c0_86, %c0_87] : memref<1x32xf32, #tpu.memory_space<vmem>>, vector<1x32xf32>
    %121 = vector.broadcast %120 : vector<1x32xf32> to vector<25x32xf32>
    %122 = arith.mulf %119, %121 : vector<25x32xf32>
    %c0_88 = arith.constant 0 : index
    %c0_89 = arith.constant 0 : index
    %123 = vector.load %arg8[%c0_88, %c0_89] : memref<1x32xf32, #tpu.memory_space<vmem>>, vector<1x32xf32>
    %124 = vector.broadcast %123 : vector<1x32xf32> to vector<25x32xf32>
    %125 = arith.addf %122, %124 : vector<25x32xf32>
    %cst_90 = arith.constant 0.000000e+00 : f32
    %126 = vector.broadcast %cst_90 : f32 to vector<25x32xf32>
    %127 = arith.cmpf ogt, %125, %126 : vector<25x32xf32>
    %cst_91 = arith.constant 2.000000e-01 : f32
    %128 = vector.broadcast %cst_91 : f32 to vector<25x32xf32>
    %129 = arith.mulf %128, %125 : vector<25x32xf32>
    %130 = arith.select %127, %125, %129 : vector<25x32xi1>, vector<25x32xf32>
    %c0_92 = arith.constant 0 : index
    %c0_93 = arith.constant 0 : index
    %c0_94 = arith.constant 0 : index
    %131 = vector.load %arg13[%c0_92, %c0_93, %c0_94] : memref<1x25x32xf32, #tpu.memory_space<vmem>>, vector<1x25x32xf32>
    %132 = vector.shape_cast %131 : vector<1x25x32xf32> to vector<25x32xf32>
    %133 = vector.shape_cast %130 : vector<25x32xf32> to vector<1x25x32xf32>
    tpu.vector_store %arg13[%c0_92, %c0_93, %c0_94], %133 {strides = array<i32>} : memref<1x25x32xf32, #tpu.memory_space<vmem>>, vector<1x25x32xf32>,
    %c0_95 = arith.constant 0 : index
    %c0_96 = arith.constant 0 : index
    %134 = vector.load %arg10[%c0_95, %c0_96] : memref<1x32xf32, #tpu.memory_space<vmem>>, vector<1x32xf32>
    %135 = vector.broadcast %134 : vector<1x32xf32> to vector<25x32xf32>
    %136 = arith.mulf %130, %135 : vector<25x32xf32>
    %cst_97 = arith.constant dense<0.000000e+00> : vector<25xf32>
    %137 = vector.multi_reduction <add>, %136, %cst_97 [1] : vector<25x32xf32> to vector<25xf32>
    %138 = vector.shape_cast %137 : vector<25xf32> to vector<25x1xf32>
    %c0_98 = arith.constant 0 : index
    %c0_99 = arith.constant 0 : index
    %139 = vector.load %arg11[%c0_98, %c0_99] : memref<1x1xf32, #tpu.memory_space<vmem>>, vector<1x1xf32>
    %140 = vector.broadcast %139 : vector<1x1xf32> to vector<25x1xf32>
    %141 = arith.addf %138, %140 : vector<25x1xf32>
    %c0_100 = arith.constant 0 : index
    %c0_101 = arith.constant 0 : index
    %c0_102 = arith.constant 0 : index
    %142 = vector.load %arg14[%c0_100, %c0_101, %c0_102] : memref<1x25x1xf32, #tpu.memory_space<vmem>>, vector<1x25x1xf32>
    %143 = vector.shape_cast %142 : vector<1x25x1xf32> to vector<25x1xf32>
    %144 = vector.shape_cast %141 : vector<25x1xf32> to vector<1x25x1xf32>
    tpu.vector_store %arg14[%c0_100, %c0_101, %c0_102], %144 {strides = array<i32>} : memref<1x25x1xf32, #tpu.memory_space<vmem>>, vector<1x25x1xf32>,
    return
  }
  func.func @transform_0(%arg0: i32) -> (i32, i32, i32) {
    %c0_i32 = arith.constant 0 : i32
    %c0_i32_0 = arith.constant 0 : i32
    %c0_i32_1 = arith.constant 0 : i32
    return %arg0, %c0_i32, %c0_i32_0 : i32, i32, i32
  }
  func.func @transform_1(%arg0: i32) -> (i32, i32) {
    %c0_i32 = arith.constant 0 : i32
    %c0_i32_0 = arith.constant 0 : i32
    %c0_i32_1 = arith.constant 0 : i32
    return %c0_i32, %c0_i32_0 : i32, i32
  }
  func.func @transform_2(%arg0: i32) -> (i32, i32) {
    %c0_i32 = arith.constant 0 : i32
    %c0_i32_0 = arith.constant 0 : i32
    %c0_i32_1 = arith.constant 0 : i32
    return %c0_i32, %c0_i32_0 : i32, i32
  }
  func.func @transform_3(%arg0: i32) -> (i32, i32) {
    %c0_i32 = arith.constant 0 : i32
    %c0_i32_0 = arith.constant 0 : i32
    %c0_i32_1 = arith.constant 0 : i32
    return %c0_i32, %c0_i32_0 : i32, i32
  }
  func.func @transform_4(%arg0: i32) -> (i32, i32, i32) {
    %c0_i32 = arith.constant 0 : i32
    %c0_i32_0 = arith.constant 0 : i32
    %c0_i32_1 = arith.constant 0 : i32
    %c0_i32_2 = arith.constant 0 : i32
    return %c0_i32, %c0_i32_0, %c0_i32_1 : i32, i32, i32
  }
  func.func @transform_5(%arg0: i32) -> (i32, i32) {
    %c0_i32 = arith.constant 0 : i32
    %c0_i32_0 = arith.constant 0 : i32
    %c0_i32_1 = arith.constant 0 : i32
    return %c0_i32, %c0_i32_0 : i32, i32
  }
  func.func @transform_6(%arg0: i32) -> (i32, i32) {
    %c0_i32 = arith.constant 0 : i32
    %c0_i32_0 = arith.constant 0 : i32
    %c0_i32_1 = arith.constant 0 : i32
    return %c0_i32, %c0_i32_0 : i32, i32
  }
  func.func @transform_7(%arg0: i32) -> (i32, i32) {
    %c0_i32 = arith.constant 0 : i32
    %c0_i32_0 = arith.constant 0 : i32
    %c0_i32_1 = arith.constant 0 : i32
    return %c0_i32, %c0_i32_0 : i32, i32
  }
  func.func @transform_8(%arg0: i32) -> (i32, i32, i32) {
    %c0_i32 = arith.constant 0 : i32
    %c0_i32_0 = arith.constant 0 : i32
    %c0_i32_1 = arith.constant 0 : i32
    %c0_i32_2 = arith.constant 0 : i32
    return %c0_i32, %c0_i32_0, %c0_i32_1 : i32, i32, i32
  }
  func.func @transform_9(%arg0: i32) -> (i32, i32) {
    %c0_i32 = arith.constant 0 : i32
    %c0_i32_0 = arith.constant 0 : i32
    %c0_i32_1 = arith.constant 0 : i32
    return %c0_i32, %c0_i32_0 : i32, i32
  }
  func.func @transform_10(%arg0: i32) -> (i32, i32) {
    %c0_i32 = arith.constant 0 : i32
    %c0_i32_0 = arith.constant 0 : i32
    %c0_i32_1 = arith.constant 0 : i32
    return %c0_i32, %c0_i32_0 : i32, i32
  }
  func.func @transform_11(%arg0: i32) -> (i32, i32, i32) {
    %c0_i32 = arith.constant 0 : i32
    %c0_i32_0 = arith.constant 0 : i32
    %c0_i32_1 = arith.constant 0 : i32
    return %arg0, %c0_i32, %c0_i32_0 : i32, i32, i32
  }
  func.func @transform_12(%arg0: i32) -> (i32, i32, i32) {
    %c0_i32 = arith.constant 0 : i32
    %c0_i32_0 = arith.constant 0 : i32
    %c0_i32_1 = arith.constant 0 : i32
    return %arg0, %c0_i32, %c0_i32_0 : i32, i32, i32
  }
  func.func @transform_13(%arg0: i32) -> (i32, i32, i32) {
    %c0_i32 = arith.constant 0 : i32
    %c0_i32_0 = arith.constant 0 : i32
    %c0_i32_1 = arith.constant 0 : i32
    return %arg0, %c0_i32, %c0_i32_0 : i32, i32, i32
  }
}

</mosaic_0001>

<bundles_post_ra>
// kernel: discriminator_forward.1
= control target key start
LH: loop header
LB: loop body
LE: loop exit
PB: predicated region body
PF: predicated region fallthrough
CT: control target
= control target key end

     0   :  { %s3337_s27 = smov 0   ;;  %s4049_s0 = inlined_call_operand.vmem [shape: f32[2,196,128], index: 0, kind: input, shape index: {}]   ;;  %s4050_s1 = inlined_call_operand.vmem [shape: f32[128,16], index: 1, kind: input, shape index: {}]   ;;  %s4051_s2 = inlined_call_operand.vmem [shape: f32[1,16], index: 2, kind: input, shape index: {}]   ;;  %s4052_s3 = inlined_call_operand.vmem [shape: f32[49,196], index: 3, kind: input, shape index: {}]   ;;  %s4053_s4 = inlined_call_operand.vmem [shape: f32[9,16,32], index: 4, kind: input, shape index: {}]   ;;  %s4054_s5 = inlined_call_operand.vmem [shape: f32[1,32], index: 5, kind: input, shape index: {}]   ;;  %s4055_s6 = inlined_call_operand.vmem [shape: f32[1,32], index: 6, kind: input, shape index: {}]   ;;  %s4056_s7 = inlined_call_operand.vmem [shape: f32[1,32], index: 7, kind: input, shape index: {}]   ;;  %s4057_s8 = inlined_call_operand.vmem [shape: f32[9,25,49], index: 8, kind: input, shape index: {}]   ;;  %s4058_s9 = inlined_call_operand.vmem [shape: f32[1,32], index: 9, kind: input, shape index: {}]   ;;  %s4059_s10 = inlined_call_operand.<no memory space> [shape: f32[1,1], index: 10, kind: input, shape index: {}]   ;;  %s4060_s11 = inlined_call_operand.vmem [shape: f32[2,49,16], index: 11, kind: output, shape index: {0}]   ;;  %s4061_s12 = inlined_call_operand.vmem [shape: f32[2,25,32], index: 12, kind: output, shape index: {1}]   ;;  %s4062_s13 = inlined_call_operand.vmem [shape: f32[2,25,1], index: 13, kind: output, shape index: {2}]  }
   0x1   :  { %v19_v0 = vstv %s4059_s10 }
   0x2   :  { %20 = vst [vmem:[#allocation2] sm:$0x1] %v19_v0 }
   0x3 LB: > { %s2651_s28 = sadd.s32 4294967295, %s3260_s27   ;;  %p2655_p0 = scmp.ge.s32.totalorder %s3260_s27, 1  ;;  %s3260_s27 = sphi %s3337_s27, %s26_s27  }
   0x4   : > { %p394_p1 = scmp.lt.s32.totalorder %s3260_s27, 3 }
   0x6   : > { %p395_p2 = pnand %p2655_p0, %p394_p1 }
   0x7   : > { %p448_p3 = scmp.lt.s32.totalorder (!%p395_p2), %s2651_s28, 1 }
   0x8   : > { %398 = sbr.rel (%p395_p2) target bundleno = 2329 (0x919), region = 64 }
   0xd   : > { %v521_v1 = vld [vmem:[%s4050_s1 + $0x70] sm:$0xff]  ;;  %v522_v2 = vld [vmem:[%s4050_s1 + $0x78] sm:$0xff]  ;;  %v519_v3 = vld [vmem:[%s4050_s1 + $0x60] sm:$0xff]  ;;  %v3262_v4 = vmov 0.0   ;;  %vm3263_vm0 = vmmov 0   ;;  %s4064_s28 = smov (!%p448_p3, %s2651_s28), 1 }
   0xe   : > { %2938 = vmatprep.subr.bf16.mxu0 %v3262_v4  ;;  %v530_v5 = vpack.c.bf16 %v522_v2, %v521_v1  ;;  %v520_v6 = vld [vmem:[%s4050_s1 + $0x68] sm:$0xff]  ;;  %2954 = vmatprep.mubr.msk.bf16.mxu0 %vm3263_vm0, %v3262_v4  ;;  %v517_v8 = vld [vmem:[%s4050_s1 + $0x50] sm:$0xff]  ;;  %v518_v9 = vld [vmem:[%s4050_s1 + $0x58] sm:$0xff]  ;;  %s3240_s23 = smul.u32 200, %s4064_s28  ;;  %vm763_vm1 = vcmask 556032   ;;  %s2789_s19 = sshll.u32 %s4064_s28, 5 }
   0xf   : > { %789 = vmatprep.subr.mxu1 %v3262_v4  ;;  %v529_v7 = vpack.c.bf16 %v520_v6, %v519_v3  ;;  %v528_v10 = vpack.c.bf16 %v518_v9, %v517_v8  ;;  %v515_v11 = vld [vmem:[%s4050_s1 + $0x40] sm:$0xff]  ;;  %v516_v12 = vld [vmem:[%s4050_s1 + $0x48] sm:$0xff]  ;;  %v513_v14 = vld [vmem:[%s4050_s1 + $0x30] sm:$0xff]  ;;  %s3241_s17 = smul.u32 56, %s4064_s28  ;;  %s462_s24 = scalar_lea.vmem %s4061_s12, %s2789_s19 }
  0x10   : > { %2939 = vmatpush3.bf16.msra.mxu0 %v530_v5  ;;  %v527_v13 = vpack.c.bf16 %v516_v12, %v515_v11  ;;  %v514_v15 = vld [vmem:[%s4050_s1 + $0x38] sm:$0xff]  ;;  %v511_v17 = vld [vmem:[%s4050_s1 + $0x20] sm:$0xff]  ;;  %v512_v18 = vld [vmem:[%s4050_s1 + $0x28] sm:$0xff]  ;;  %s3413_s14 = scalar_lea.vmem %s4049_s0, %s3240_s23  ;;  %s467_s29 = scalar_lea.vmem %s4062_s13, %s2789_s19 }
  0x11   : > { %2940 = vmatprep.subr.bf16.mxu0 %v3262_v4  ;;  %v526_v16 = vpack.c.bf16 %v514_v15, %v513_v14  ;;  %v525_v19 = vpack.c.bf16 %v512_v18, %v511_v17  ;;  %v509_v20 = vld [vmem:[%s4050_s1 + $0x10] sm:$0xff]  ;;  %v510_v21 = vld [vmem:[%s4050_s1 + $0x18] sm:$0xff]  ;;  %v507_v23 = vld [vmem:[%s4050_s1] sm:$0xff]  ;;  %s457_s20 = scalar_lea.vmem %s4060_s11, %s3241_s17 }
  0x12   : > { %v524_v22 = vpack.c.bf16 %v510_v21, %v509_v20  ;;  %v508_v24 = vld [vmem:[%s4050_s1 + $0x8] sm:$0xff]  ;;  %v469_v26 = vld [vmem:[%s3413_s14] sm:$0xff]  ;;  %v471_v29 = vld [vmem:[%s3413_s14 + $0x10] sm:$0xff] }
  0x13   : > { %v523_v25 = vpack.c.bf16 %v508_v24, %v507_v23  ;;  %v470_v27 = vld [vmem:[%s3413_s14 + $0x8] sm:$0xff]  ;;  %v472_v30 = vld [vmem:[%s3413_s14 + $0x18] sm:$0xff]  ;;  %v473_v32 = vld [vmem:[%s3413_s14 + $0x20] sm:$0xff] }
  0x14   : > { %2941 = vmatpush3.bf16.msra.mxu0 %v529_v7  ;;  %v494_v28 = vpack.c.bf16 %v470_v27, %v469_v26  ;;  %v495_v31 = vpack.c.bf16 %v472_v30, %v471_v29  ;;  %v474_v33 = vld [vmem:[%s3413_s14 + $0x28] sm:$0xff]  ;;  %v475_v35 = vld [vmem:[%s3413_s14 + $0x30] sm:$0xff]  ;;  %v476_v36 = vld [vmem:[%s3413_s14 + $0x38] sm:$0xff] }
  0x15   : > { %2942 = vmatprep.subr.bf16.mxu0 %v3262_v4  ;;  %v496_v34 = vpack.c.bf16 %v474_v33, %v473_v32  ;;  %v497_v37 = vpack.c.bf16 %v476_v36, %v475_v35  ;;  %v477_v38 = vld [vmem:[%s3413_s14 + $0x40] sm:$0xff]  ;;  %v478_v39 = vld [vmem:[%s3413_s14 + $0x48] sm:$0xff]  ;;  %v479_v41 = vld [vmem:[%s3413_s14 + $0x50] sm:$0xff] }
  0x16   : > { %v498_v40 = vpack.c.bf16 %v478_v39, %v477_v38  ;;  %v480_v42 = vld [vmem:[%s3413_s14 + $0x58] sm:$0xff]  ;;  %v481_v44 = vld [vmem:[%s3413_s14 + $0x60] sm:$0xff]  ;;  %v482_v45 = vld [vmem:[%s3413_s14 + $0x68] sm:$0xff] }
  0x17   : > { %v499_v43 = vpack.c.bf16 %v480_v42, %v479_v41  ;;  %v500_v46 = vpack.c.bf16 %v482_v45, %v481_v44  ;;  %v483_v47 = vld [vmem:[%s3413_s14 + $0x70] sm:$0xff]  ;;  %v484_v48 = vld [vmem:[%s3413_s14 + $0x78] sm:$0xff]  ;;  %v485_v50 = vld [vmem:[%s3413_s14 + $0x80] sm:$0xff] }
  0x18   : > { %2943 = vmatpush3.bf16.msra.mxu0 %v528_v10  ;;  %v501_v49 = vpack.c.bf16 %v484_v48, %v483_v47  ;;  %v486_v51 = vld [vmem:[%s3413_s14 + $0x88] sm:$0xff]  ;;  %v487_v53 = vld [vmem:[%s3413_s14 + $0x90] sm:$0xff]  ;;  %v488_v54 = vld [vmem:[%s3413_s14 + $0x98] sm:$0xff] }
  0x19   : > { %2944 = vmatprep.subr.bf16.mxu0 %v3262_v4  ;;  %v502_v52 = vpack.c.bf16 %v486_v51, %v485_v50  ;;  %v503_v55 = vpack.c.bf16 %v488_v54, %v487_v53  ;;  %v489_v56 = vld [vmem:[%s3413_s14 + $0xa0] sm:$0xff]  ;;  %v490_v57 = vld [vmem:[%s3413_s14 + $0xa8] sm:$0xff]  ;;  %v491_v59 = vld [vmem:[%s3413_s14 + $0xb0] sm:$0xff] }
  0x1a   : > { %v504_v58 = vpack.c.bf16 %v490_v57, %v489_v56  ;;  %v492_v60 = vld [vmem:[%s3413_s14 + $0xb8] sm:$0xff]  ;;  %v493_v62 = vld [vmem:[%s3413_s14 + $0xc0] sm:$0xf]  ;;  %v750_v0 = vld [vmem:[%s4052_s3 + $0x8] sm:$0xff] }
  0x1b   : > { %v505_v61 = vpack.c.bf16 %v492_v60, %v491_v59  ;;  %v506_v63 = vpack.c.bf16 %v493_v62, %v493_v62  ;;  %2664 = vmatprep.mubr.msk.f32.mxu1 %vm763_vm1, %v750_v0 }
  0x1c   : > { %2945 = vmatpush3.bf16.msra.mxu0 %v527_v13 }
  0x1d   : > { %2946 = vmatprep.subr.bf16.mxu0 %v3262_v4 }
  0x20   : > { %2947 = vmatpush3.bf16.msra.mxu0 %v526_v16 }
  0x21   : > { %2948 = vmatprep.subr.bf16.mxu0 %v3262_v4 }
  0x24   : > { %2949 = vmatpush3.bf16.msra.mxu0 %v525_v19 }
  0x25   : > { %2950 = vmatprep.subr.bf16.mxu0 %v3262_v4 }
  0x28   : > { %2951 = vmatpush3.bf16.msra.mxu0 %v524_v22 }
  0x29   : > { %2952 = vmatprep.subr.bf16.mxu0 %v3262_v4 }
  0x2c   : > { %2953 = vmatpush3.bf16.msra.mxu0 %v523_v25 }
  0x2f   : > { %2955 = vmatmul.mubr.bf16.vlgmr.msra.gmra.mxu0 %v494_v28 }
  0x30   : > { %2958 = vmatprep.mubr.msk.bf16.mxu0 %vm3263_vm0, %v3262_v4 }
  0x37   : > { %2959 = vmatmul.mubr.bf16.gmra.mxu0 %v495_v31  ;;  %v3486_v31 = vld [vmem:[%s4051_s2] ss:$0 sm:$0xff] }
  0x38   : > { %2962 = vmatprep.mubr.msk.bf16.mxu0 %vm3263_vm0, %v3262_v4 }
  0x3f   : > { %2963 = vmatmul.mubr.bf16.gmra.mxu0 %v496_v34 }
  0x40   : > { %2966 = vmatprep.mubr.msk.bf16.mxu0 %vm3263_vm0, %v3262_v4 }
  0x47   : > { %2967 = vmatmul.mubr.bf16.gmra.mxu0 %v497_v37 }
  0x48   : > { %2970 = vmatprep.mubr.msk.bf16.mxu0 %vm3263_vm0, %v3262_v4 }
  0x4f   : > { %2971 = vmatmul.mubr.bf16.gmra.mxu0 %v498_v40 }
  0x50   : > { %2974 = vmatprep.mubr.msk.bf16.mxu0 %vm3263_vm0, %v3262_v4 }
  0x57   : > { %2975 = vmatmul.mubr.bf16.gmra.mxu0 %v499_v43 }
  0x58   : > { %2978 = vmatprep.mubr.msk.bf16.mxu0 %vm3263_vm0, %v3262_v4 }
  0x5f   : > { %2979 = vmatmul.mubr.bf16.gmra.mxu0 %v500_v46 }
  0x60   : > { %2982 = vmatprep.mubr.msk.bf16.mxu0 %vm3263_vm0, %v3262_v4 }
  0x67   : > { %2983 = vmatmul.mubr.bf16.gmra.mxu0 %v501_v49 }
  0x68   : > { %2986 = vmatprep.mubr.msk.bf16.mxu0 %vm3263_vm0, %v3262_v4 }
  0x6f   : > { %2987 = vmatmul.mubr.bf16.gmra.mxu0 %v502_v52 }
  0x70   : > { %2990 = vmatprep.mubr.msk.bf16.mxu0 %vm3263_vm0, %v3262_v4 }
  0x77   : > { %2991 = vmatmul.mubr.bf16.gmra.mxu0 %v503_v55 }
  0x78   : > { %2994 = vmatprep.mubr.msk.bf16.mxu0 %vm3263_vm0, %v3262_v4 }
  0x7f   : > { %2995 = vmatmul.mubr.bf16.gmra.mxu0 %v504_v58 }
  0x80   : > { %2998 = vmatprep.mubr.msk.bf16.mxu0 %vm3263_vm0, %v3262_v4 }
  0x87   : > { %2999 = vmatmul.mubr.bf16.gmra.mxu0 %v505_v61 }
  0x88   : > { %3002 = vmatprep.mubr.msk.bf16.mxu0 %vm3263_vm0, %v3262_v4 }
  0x8f   : > { %3003 = vmatmul.mubr.bf16.gmra.mxu0 %v506_v63 }
  0xef   : > { %v3469_v1 = vpop.f32.mrf.mxu0 }
  0xf1   : > { %v2956_v2 = vpop.f32.mrf.mxu0 }
  0xf3   : > { %v3471_v3 = vpop.f32.mrf.mxu0 }
  0xf5   : > { %v2957_v5 = vpop.f32.mrf.mxu0 }
  0xf7   : > { %v3473_v6 = vpop.f32.mrf.mxu0 }
  0xf9   : > { %v2960_v7 = vpop.f32.mrf.mxu0 }
  0xfb   : > { %v3475_v8 = vpop.f32.mrf.mxu0 }
  0xfd   : > { %v2961_v9 = vpop.f32.mrf.mxu0 }
  0xff   : > { %v3477_v10 = vpop.f32.mrf.mxu0 }
 0x101   : > { %v2964_v11 = vpop.f32.mrf.mxu0 }
 0x103   : > { %v3479_v12 = vpop.f32.mrf.mxu0 }
 0x104   : > { %v592_v5 = vadd.f32 %v3486_v31, %v3479_v12  ;;  %v584_v12 = vadd.f32 %v3486_v31, %v3475_v8  ;;  %v576_v8 = vadd.f32 %v3486_v31, %v3471_v3 }
 0x105   : > { %v2965_v13 = vpop.f32.mrf.mxu0 }
 0x106   : > { %v589_v13 = vadd.f32 %v3486_v31, %v3477_v10  ;;  %vm679_vm12 = vcmp.gt.f32.partialorder %v592_v5, 0.0  ;;  %v581_v10 = vadd.f32 %v3486_v31, %v3473_v6  ;;  %vm677_vm14 = vcmp.gt.f32.partialorder %v584_v12, 0.0 }
 0x107   : > { %v3481_v14 = vpop.f32.mrf.mxu0  ;;  %v573_v6 = vadd.f32 %v3486_v31, %v3469_v1  ;;  %vm675_vm0 = vcmp.gt.f32.partialorder %v576_v8, 0.0 }
 0x108   : > { %v597_v62 = vadd.f32 %v3486_v31, %v3481_v14  ;;  %vm678_vm13 = vcmp.gt.f32.partialorder %v589_v13, 0.0  ;;  %vm676_vm15 = vcmp.gt.f32.partialorder %v581_v10, 0.0 }
 0x109   : > { %v2968_v15 = vpop.f32.mrf.mxu0 }
 0x10a   : > { %v705_v14 = vmul.f32 0.2, %v597_v62  ;;  %vm680_vm11 = vcmp.gt.f32.partialorder %v597_v62, 0.0 }
 0x10b   : > { %v599_v16 = vpop.f32.mrf.mxu0 }
 0x10c   : > { %v600_v58 = vadd.f32 %v3486_v31, %v599_v16 }
 0x10d   : > { %v2969_v17 = vpop.f32.mrf.mxu0 }
 0x10e   : > { %v706_v7 = vmul.f32 0.2, %v600_v58  ;;  %vm681_vm10 = vcmp.gt.f32.partialorder %v600_v58, 0.0  ;;  %v704_v17 = vmul.f32 0.2, %v592_v5 }
 0x10f   : > { %v604_v18 = vpop.f32.mrf.mxu0 }
 0x110   : > { %v605_v54 = vadd.f32 %v3486_v31, %v604_v18  ;;  %v731_v18 = vsel %vm681_vm10, %v600_v58, %v706_v7 }
 0x111   : > { %v2972_v19 = vpop.f32.mrf.mxu0 }
 0x112   : > { %v707_v63 = vmul.f32 0.2, %v605_v54  ;;  %vm682_vm9 = vcmp.gt.f32.partialorder %v605_v54, 0.0 }
 0x113   : > { %v607_v20 = vpop.f32.mrf.mxu0 }
 0x114   : > { %v608_v50 = vadd.f32 %v3486_v31, %v607_v20  ;;  %v732_v15 = vsel %vm682_vm9, %v605_v54, %v707_v63  ;;  %v703_v20 = vmul.f32 0.2, %v589_v13 }
 0x115   : > { %v2973_v21 = vpop.f32.mrf.mxu0 }
 0x116   : > { %v708_v59 = vmul.f32 0.2, %v608_v50  ;;  %vm683_vm8 = vcmp.gt.f32.partialorder %v608_v50, 0.0  ;;  %v730_v21 = vsel %vm680_vm11, %v597_v62, %v705_v14  ;;  %v756_v14 = vld [vmem:[%s4052_s3 + $0x38] sm:$0xff] }
 0x117   : > { %v612_v22 = vpop.f32.mrf.mxu0 }
 0x118   : > { %v613_v46 = vadd.f32 %v3486_v31, %v612_v22  ;;  %v733_v9 = vsel %vm683_vm8, %v608_v50, %v708_v59 }
 0x119   : > { %v2976_v23 = vpop.f32.mrf.mxu0 }
 0x11a   : > { %v709_v55 = vmul.f32 0.2, %v613_v46  ;;  %vm684_vm7 = vcmp.gt.f32.partialorder %v613_v46, 0.0  ;;  %v702_v23 = vmul.f32 0.2, %v584_v12 }
 0x11b   : > { %v615_v24 = vpop.f32.mrf.mxu0 }
 0x11c   : > { %v616_v42 = vadd.f32 %v3486_v31, %v615_v24  ;;  %v734_v0 = vsel %vm684_vm7, %v613_v46, %v709_v55  ;;  %v729_v24 = vsel %vm679_vm12, %v592_v5, %v704_v17  ;;  %v727_v3 = vsel %vm677_vm14, %v584_v12, %v702_v23  ;;  %v757_v12 = vld [vmem:[%s4052_s3 + $0x40] sm:$0xff]  ;;  %v760_v17 = vld [vmem:[%s4052_s3 + $0x58] sm:$0xff] }
 0x11d   : > { %v2977_v25 = vpop.f32.mrf.mxu0  ;;  %vm896_vm14 = vcmask 122880  }
 0x11e   : > { %v710_v51 = vmul.f32 0.2, %v616_v42  ;;  %vm685_vm6 = vcmp.gt.f32.partialorder %v616_v42, 0.0 }
 0x11f   : > { %v620_v26 = vpop.f32.mrf.mxu0 }
 0x120   : > { %v621_v38 = vadd.f32 %v3486_v31, %v620_v26  ;;  %v735_v60 = vsel %vm685_vm6, %v616_v42, %v710_v51  ;;  %v701_v26 = vmul.f32 0.2, %v581_v10 }
 0x121   : > { %v2980_v27 = vpop.f32.mrf.mxu0 }
 0x122   : > { %v711_v47 = vmul.f32 0.2, %v621_v38  ;;  %vm686_vm5 = vcmp.gt.f32.partialorder %v621_v38, 0.0  ;;  %v728_v27 = vsel %vm678_vm13, %v589_v13, %v703_v20  ;;  %v754_v13 = vld [vmem:[%s4052_s3 + $0x28] sm:$0xff]  ;;  %v898_v20 = vld [vmem:[%s4057_s8] sm:$0xff]  ;;  %vm902_vm13 = vcmask 400384  }
 0x123   : > { %v623_v28 = vpop.f32.mrf.mxu0 }
 0x124   : > { %v624_v35 = vadd.f32 %v3486_v31, %v623_v28  ;;  %v736_v56 = vsel %vm686_vm5, %v621_v38, %v711_v47 }
 0x125   : > { %v2981_v29 = vpop.f32.mrf.mxu0 }
 0x126   : > { %v712_v43 = vmul.f32 0.2, %v624_v35  ;;  %vm687_vm4 = vcmp.gt.f32.partialorder %v624_v35, 0.0  ;;  %v700_v29 = vmul.f32 0.2, %v576_v8 }
 0x127   : > { %v628_v30 = vpop.f32.mrf.mxu0 }
 0x128   : > { %v629_v33 = vadd.f32 %v3486_v31, %v628_v30  ;;  %v737_v52 = vsel %vm687_vm4, %v624_v35, %v712_v43  ;;  %v725_v1 = vsel %vm675_vm0, %v576_v8, %v700_v29  ;;  %vm2407_vm0 = vcmask 261120  }
 0x129   : > { %v2984_v32 = vpop.f32.mrf.mxu0 }
 0x12a   : > { %v713_v39 = vmul.f32 0.2, %v629_v33  ;;  %vm688_vm3 = vcmp.gt.f32.partialorder %v629_v33, 0.0  ;;  %v699_v32 = vmul.f32 0.2, %v573_v6 }
 0x12b   : > { %v631_v34 = vpop.f32.mrf.mxu0 }
 0x12c   : > { %v632_v36 = vadd.f32 %v3486_v31, %v631_v34  ;;  %v738_v48 = vsel %vm688_vm3, %v629_v33, %v713_v39  ;;  %v726_v33 = vsel %vm676_vm15, %v581_v10, %v701_v26  ;;  %vm785_vm3 = vcmask 1043456   ;;  %v761_v10 = vld [vmem:[%s4052_s3 + $0x60] sm:$0x1] }
 0x12d   : > { %v2985_v37 = vpop.f32.mrf.mxu0  ;;  %vm915_vm15 = vcmask 1040384  }
 0x12e   : > { %vm689_vm2 = vcmp.gt.f32.partialorder %v632_v36, 0.0  ;;  %v714_v40 = vmul.f32 0.2, %v632_v36 }
 0x12f   : > { %v3492_v41 = vpop.f32.mrf.mxu0 }
 0x130   : > { %v739_v44 = vsel %vm689_vm2, %v632_v36, %v714_v40  ;;  %vm674_vm2 = vcmp.gt.f32.partialorder %v573_v6, 0.0  ;;  %v637_v62 = vadd.f32 %v3486_v31, %v3492_v41  ;;  %v749_v41 = vld [vmem:[%s4052_s3] sm:$0xff] }
 0x131   : > { %v2988_v45 = vpop.f32.mrf.mxu0  ;;  %790 = vmatpush1.msra.mxu1 %v739_v44  ;;  %v724_v37 = vsel %vm674_vm2, %v573_v6, %v699_v32  ;;  %vm2413_vm2 = vcmask 253952  }
 0x132   : > { %791 = vmatprep.subr.mxu1 %v3262_v4  ;;  %vm690_vm12 = vcmp.gt.f32.partialorder %v637_v62, 0.0 }
 0x133   : > { %v3497_v49 = vpop.f32.mrf.mxu0  ;;  %792 = vmatpush1.msra.mxu1 %v738_v48 }
 0x134   : > { %793 = vmatprep.subr.mxu1 %v3262_v4  ;;  %v640_v59 = vadd.f32 %v3486_v31, %v3497_v49  ;;  %v715_v49 = vmul.f32 0.2, %v637_v62 }
 0x135   : > { %v2989_v53 = vpop.f32.mrf.mxu0  ;;  %794 = vmatpush1.msra.mxu1 %v737_v52 }
 0x136   : > { %795 = vmatprep.subr.mxu1 %v3262_v4  ;;  %vm691_vm11 = vcmp.gt.f32.partialorder %v640_v59, 0.0  ;;  %v740_v7 = vsel %vm690_vm12, %v637_v62, %v715_v49 }
 0x137   : > { %v3503_v57 = vpop.f32.mrf.mxu0  ;;  %796 = vmatpush1.msra.mxu1 %v736_v56 }
 0x138   : > { %797 = vmatprep.subr.mxu1 %v3262_v4  ;;  %v645_v55 = vadd.f32 %v3486_v31, %v3503_v57 }
 0x139   : > { %v2992_v61 = vpop.f32.mrf.mxu0  ;;  %798 = vmatpush1.msra.mxu1 %v735_v60 }
 0x13a   : > { %799 = vmatprep.subr.mxu1 %v3262_v4  ;;  %v717_v63 = vmul.f32 0.2, %v645_v55  ;;  %vm692_vm10 = vcmp.gt.f32.partialorder %v645_v55, 0.0 }
 0x13b   : > { %v3510_v2 = vpop.f32.mrf.mxu0  ;;  %800 = vmatpush1.msra.mxu1 %v734_v0  ;;  %v716_v0 = vmul.f32 0.2, %v640_v59 }
 0x13c   : > { %801 = vmatprep.subr.mxu1 %v3262_v4  ;;  %v648_v52 = vadd.f32 %v3486_v31, %v3510_v2  ;;  %v742_v5 = vsel %vm692_vm10, %v645_v55, %v717_v63 }
 0x13d   : > { %v2993_v11 = vpop.f32.mrf.mxu0  ;;  %802 = vmatpush1.msra.mxu1 %v733_v9  ;;  %v752_v9 = vld [vmem:[%s4052_s3 + $0x18] sm:$0xff] }
 0x13e   : > { %803 = vmatprep.subr.mxu1 %v3262_v4  ;;  %v718_v60 = vmul.f32 0.2, %v648_v52  ;;  %vm693_vm9 = vcmp.gt.f32.partialorder %v648_v52, 0.0  ;;  %v751_v11 = vld [vmem:[%s4052_s3 + $0x10] sm:$0xff] }
 0x13f   : > { %v3518_v16 = vpop.f32.mrf.mxu0  ;;  %804 = vmatpush1.msra.mxu1 %v732_v15  ;;  %v755_v15 = vld [vmem:[%s4052_s3 + $0x30] sm:$0xff] }
 0x140   : > { %805 = vmatprep.subr.mxu1 %v3262_v4  ;;  %v653_v47 = vadd.f32 %v3486_v31, %v3518_v16  ;;  %v743_v2 = vsel %vm693_vm9, %v648_v52, %v718_v60  ;;  %v758_v16 = vld [vmem:[%s4052_s3 + $0x48] sm:$0xff] }
 0x141   : > { %v2996_v19 = vpop.f32.mrf.mxu0  ;;  %806 = vmatpush1.msra.mxu1 %v731_v18  ;;  %v759_v18 = vld [vmem:[%s4052_s3 + $0x50] sm:$0xff] }
 0x142   : > { %807 = vmatprep.subr.mxu1 %v3262_v4  ;;  %v719_v56 = vmul.f32 0.2, %v653_v47  ;;  %vm694_vm8 = vcmp.gt.f32.partialorder %v653_v47, 0.0  ;;  %v762_v19 = vld [vmem:[%s4052_s3 + $0x68] sm:$0x1] }
 0x143   : > { %v655_v22 = vpop.f32.mrf.mxu0  ;;  %808 = vmatpush1.msra.mxu1 %v730_v21  ;;  %v2704_v21 = vld [vmem:[%s4057_s8 + $0x60] sm:$0xff] }
 0x144   : > { %809 = vmatprep.subr.mxu1 %v3262_v4  ;;  %v656_v43 = vadd.f32 %v3486_v31, %v655_v22  ;;  %v744_v57 = vsel %vm694_vm8, %v653_v47, %v719_v56  ;;  %3098 = vmatprep.mubr.msk.f32.mxu0 %vm902_vm13, %v2704_v21  ;;  %v2678_v47 = vld [vmem:[%s4057_s8 + $0x30] sm:$0xff]  ;;  %vm2528_vm8 = vcmask 0  }
 0x145   : > { %v2997_v25 = vpop.f32.mrf.mxu0  ;;  %810 = vmatpush1.msra.mxu1 %v729_v24  ;;  %v2719_v56 = vld [vmem:[%s4057_s8 + $0x90] sm:$0xff] }
 0x146   : > { %811 = vmatprep.subr.mxu1 %v3262_v4  ;;  %v720_v53 = vmul.f32 0.2, %v656_v43  ;;  %vm695_vm7 = vcmp.gt.f32.partialorder %v656_v43, 0.0 }
 0x147   : > { %v660_v28 = vpop.f32.mrf.mxu0  ;;  %812 = vmatpush1.msra.mxu1 %v728_v27 }
 0x148   : > { %813 = vmatprep.subr.mxu1 %v3262_v4  ;;  %v661_v39 = vadd.f32 %v3486_v31, %v660_v28  ;;  %v745_v61 = vsel %vm695_vm7, %v656_v43, %v720_v53  ;;  %v2677_v43 = vld [vmem:[%s4057_s8 + $0x28] sm:$0xff]  ;;  %v1006_v53 = vld [vmem:[%s4053_s4] sm:$0xff]  ;;  %vm2524_vm7 = vcmask 7168  }
 0x149   : > { %v3000_v30 = vpop.f32.mrf.mxu0  ;;  %814 = vmatpush1.msra.mxu1 %v727_v3 }
 0x14a   : > { %815 = vmatprep.subr.mxu1 %v3262_v4  ;;  %v721_v48 = vmul.f32 0.2, %v661_v39  ;;  %vm696_vm6 = vcmp.gt.f32.partialorder %v661_v39, 0.0 }
 0x14b   : > { %v663_v34 = vpop.f32.mrf.mxu0  ;;  %816 = vmatpush1.msra.mxu1 %v726_v33 }
 0x14c   : > { %817 = vmatprep.subr.mxu1 %v3262_v4  ;;  %v664_v36 = vadd.f32 %v3486_v31, %v663_v34  ;;  %v746_v58 = vsel %vm696_vm6, %v661_v39, %v721_v48  ;;  %v899_v34 = vld [vmem:[%s4057_s8 + $0x8] sm:$0xff]  ;;  %v2739_v39 = vld [vmem:[%s4053_s4 + $0x50] sm:$0xff]  ;;  %v2679_v48 = vld [vmem:[%s4057_s8 + $0x38] sm:$0x1] }
 0x14d   : > { %v3001_v35 = vpop.f32.mrf.mxu0  ;;  %818 = vmatpush1.msra.mxu1 %v725_v1  ;;  %v2705_v1 = vld [vmem:[%s4057_s8 + $0x68] sm:$0xff] }
 0x14e   : > { %819 = vmatprep.subr.mxu1 %v3262_v4  ;;  %v722_v44 = vmul.f32 0.2, %v664_v36  ;;  %vm697_vm5 = vcmp.gt.f32.partialorder %v664_v36, 0.0  ;;  %v900_v35 = vld [vmem:[%s4057_s8 + $0x10] sm:$0xff] }
 0x14f   : > { %v668_v38 = vpop.f32.mrf.mxu0  ;;  %820 = vmatpush1.msra.mxu1 %v724_v37  ;;  %v2706_v37 = vld [vmem:[%s4057_s8 + $0x70] sm:$0xff] }
 0x150   : > { %v669_v40 = vadd.f32 %v3486_v31, %v668_v38  ;;  %835 = vmatprep.subr.mxu1 %v3262_v4  ;;  %v747_v54 = vsel %vm697_vm5, %v664_v36, %v722_v44  ;;  %v741_v31 = vsel %vm691_vm11, %v640_v59, %v716_v0  ;;  %v901_v36 = vld [vmem:[%s4057_s8 + $0x18] sm:$0x1] }
 0x151   : > { %v3004_v42 = vpop.f32.mrf.mxu0  ;;  %v2707_v38 = vld [vmem:[%s4057_s8 + $0x78] sm:$0x1] }
 0x152   : > { %vm698_vm4 = vcmp.gt.f32.partialorder %v669_v40, 0.0  ;;  %v723_v45 = vmul.f32 0.2, %v669_v40  ;;  %v2676_v42 = vld [vmem:[%s4057_s8 + $0x20] sm:$0xff] }
 0x153   : > { %v671_v46 = vpop.f32.mrf.mxu0 }
 0x154   : > { %v748_v50 = vsel %vm698_vm4, %v669_v40, %v723_v45  ;;  %v2740_v40 = vld [vmem:[%s4053_s4 + $0x58] sm:$0xff]  ;;  %v2717_v45 = vld [vmem:[%s4057_s8 + $0x80] sm:$0xff]  ;;  %v2718_v46 = vld [vmem:[%s4057_s8 + $0x88] sm:$0xff] }
 0x155   : > { %v3005_v51 = vpop.f32.mrf.mxu0  ;;  %2663 = vmatpush2.msk.msra.mxu1 %vm785_vm3, %v748_v50  ;;  %v1835_v44 = vpack.c.bf16 %v2740_v40, %v2739_v39  ;;  %v2685_v50 = vld [vmem:[%s4053_s4 + $0x10] sm:$0xff] }
 0x156   : > { %837 = vmatprep.subr.mxu1 %v3262_v4  ;;  %v2686_v51 = vld [vmem:[%s4053_s4 + $0x18] sm:$0xff] }
 0x157   : > { %838 = vmatpush2.msra.mxu1 %v747_v54  ;;  %v1116_v52 = vpack.c.bf16 %v2686_v51, %v2685_v50  ;;  %v1007_v54 = vld [vmem:[%s4053_s4 + $0x8] sm:$0xff] }
 0x158   : > { %839 = vmatprep.subr.mxu1 %v3262_v4  ;;  %v1008_v55 = vpack.c.bf16 %v1007_v54, %v1006_v53 }
 0x159   : > { %840 = vmatpush2.msra.mxu1 %v746_v58  ;;  %v2720_v58 = vld [vmem:[%s4057_s8 + $0x98] sm:$0x1] }
 0x15a   : > { %841 = vmatprep.subr.mxu1 %v3262_v4 }
 0x15b   : > { %842 = vmatpush2.msra.mxu1 %v745_v61 }
 0x15c   : > { %843 = vmatprep.subr.mxu1 %v3262_v4 }
 0x15d   : > { %844 = vmatpush2.msra.mxu1 %v744_v57 }
 0x15e   : > { %845 = vmatprep.subr.mxu1 %v3262_v4 }
 0x15f   : > { %846 = vmatpush2.msra.mxu1 %v743_v2 }
 0x160   : > { %847 = vmatprep.subr.mxu1 %v3262_v4 }
 0x161   : > { %848 = vmatpush2.msra.mxu1 %v742_v5 }
 0x162   : > { %849 = vmatprep.subr.mxu1 %v3262_v4 }
 0x163   : > { %850 = vmatpush2.msra.mxu1 %v741_v31 }
 0x164   : > { %851 = vmatprep.subr.mxu1 %v3262_v4  ;;  %v753_v4 = vld [vmem:[%s4052_s3 + $0x20] sm:$0xff] }
 0x165   : > { %852 = vmatpush2.msra.mxu1 %v740_v7  ;;  %v2691_v7 = vld [vmem:[%s4057_s8 + $0x40] sm:$0xff] }
 0x166   : > { %854 = vmatmul.mubr.f32.vlgmr.msra.gmra.mxu1 %v749_v41 }
 0x167   : > { %2665 = vmatprep.mubr.msk.f32.mxu1 %vm763_vm1, %v752_v9  ;;  %v2692_v9 = vld [vmem:[%s4057_s8 + $0x48] sm:$0xff] }
 0x16a   : > { %859 = vmatmul.mubr.f32.gmra.mxu1 %v751_v11  ;;  %v2693_v11 = vld [vmem:[%s4057_s8 + $0x50] sm:$0xff] }
 0x16b   : > { %2666 = vmatprep.mubr.msk.f32.mxu1 %vm763_vm1, %v754_v13  ;;  %v2694_v13 = vld [vmem:[%s4057_s8 + $0x58] sm:$0x1] }
 0x16e   : > { %864 = vmatmul.mubr.f32.gmra.mxu1 %v753_v4  ;;  %v2700_v4 = vld [vmem:[%s4053_s4 + $0x20] sm:$0xff] }
 0x16f   : > { %2667 = vmatprep.mubr.msk.f32.mxu1 %vm763_vm1, %v756_v14  ;;  %v2701_v14 = vld [vmem:[%s4053_s4 + $0x28] sm:$0xff] }
 0x172   : > { %869 = vmatmul.mubr.f32.gmra.mxu1 %v755_v15  ;;  %v1334_v15 = vpack.c.bf16 %v2701_v14, %v2700_v4 }
 0x173   : > { %2668 = vmatprep.mubr.msk.f32.mxu1 %vm763_vm1, %v758_v16  ;;  %v2713_v16 = vld [vmem:[%s4053_s4 + $0x30] sm:$0xff] }
 0x176   : > { %874 = vmatmul.mubr.f32.gmra.mxu1 %v757_v12  ;;  %v2714_v12 = vld [vmem:[%s4053_s4 + $0x38] sm:$0xff] }
 0x177   : > { %2669 = vmatprep.mubr.msk.f32.mxu1 %vm763_vm1, %v760_v17  ;;  %v1501_v17 = vpack.c.bf16 %v2714_v12, %v2713_v16 }
 0x17a   : > { %879 = vmatmul.mubr.f32.gmra.mxu1 %v759_v18 }
 0x17b   : > { %2670 = vmatprep.mubr.msk.f32.mxu1 %vm763_vm1, %v762_v19  ;;  %vm889_vm1 = vcmask 130048  }
 0x17e   : > { %884 = vmatmul.mubr.f32.gmra.mxu1 %v761_v10 }
 0x17f   : > { %3020 = vmatprep.mubr.msk.f32.mxu1 %vm902_vm13, %v898_v20 }
 0x226   : > { %v3616_v22 = vpop.f32.mrf.mxu1 }
 0x227   : > { %890 = vst.msk [vmem:[%s457_s20] sm:$0xff] %vm889_vm1, %v3616_v22 }
 0x228   : > { %v857_v8 = vpop.f32.mrf.mxu1 }
 0x22a   : > { %v3620_v23 = vpop.f32.mrf.mxu1 }
 0x22b   : > { %891 = vst.msk [vmem:[%s457_s20 + $0x8] sm:$0xff] %vm889_vm1, %v3620_v23 }
 0x22c   : > { %v862_v24 = vpop.f32.mrf.mxu1 }
 0x22e   : > { %v3624_v25 = vpop.f32.mrf.mxu1 }
 0x22f   : > { %892 = vst.msk [vmem:[%s457_s20 + $0x10] sm:$0xff] %vm889_vm1, %v3624_v25 }
 0x230   : > { %v867_v6 = vpop.f32.mrf.mxu1 }
 0x232   : > { %v3628_v26 = vpop.f32.mrf.mxu1 }
 0x233   : > { %893 = vst.msk [vmem:[%s457_s20 + $0x18] sm:$0xff] %vm889_vm1, %v3628_v26 }
 0x234   : > { %v872_v27 = vpop.f32.mrf.mxu1 }
 0x236   : > { %v3632_v28 = vpop.f32.mrf.mxu1 }
 0x237   : > { %894 = vst.msk [vmem:[%s457_s20 + $0x20] sm:$0xff] %vm889_vm1, %v3632_v28 }
 0x238   : > { %v877_v29 = vpop.f32.mrf.mxu1 }
 0x23a   : > { %v3636_v3 = vpop.f32.mrf.mxu1 }
 0x23b   : > { %895 = vst.msk [vmem:[%s457_s20 + $0x28] sm:$0xff] %vm889_vm1, %v3636_v3 }
 0x23c   : > { %v882_v30 = vpop.f32.mrf.mxu1 }
 0x23e   : > { %v3640_v32 = vpop.f32.mrf.mxu1 }
 0x23f   : > { %897 = vst.msk [vmem:[%s457_s20 + $0x30] sm:$0x1] %vm896_vm14, %v3640_v32  ;;  %3006 = vmatprep.subr.msk.mxu1 %vm915_vm15, %v3640_v32  ;;  %3084 = vmatprep.subr.msk.mxu0 %vm915_vm15, %v3640_v32 }
 0x240   : > { %v887_v33 = vpop.f32.mrf.mxu1  ;;  %3007 = vmatpush3.msk.msra.mxu1 %vm915_vm15, %v3640_v32  ;;  %3085 = vmatpush3.msk.msra.mxu0 %vm915_vm15, %v3640_v32 }
 0x241   : > { %3008 = vmatprep.subr.mxu1 %v3636_v3  ;;  %3086 = vmatprep.subr.mxu0 %v3636_v3 }
 0x242   : > { %3009 = vmatpush3.msra.mxu1 %v3636_v3  ;;  %3087 = vmatpush3.msra.mxu0 %v3636_v3 }
 0x243   : > { %3010 = vmatprep.subr.mxu1 %v3632_v28  ;;  %3088 = vmatprep.subr.mxu0 %v3632_v28 }
 0x244   : > { %3011 = vmatpush3.msra.mxu1 %v3632_v28  ;;  %3089 = vmatpush3.msra.mxu0 %v3632_v28 }
 0x245   : > { %3012 = vmatprep.subr.mxu1 %v3628_v26  ;;  %3090 = vmatprep.subr.mxu0 %v3628_v26 }
 0x246   : > { %3013 = vmatpush3.msra.mxu1 %v3628_v26  ;;  %3091 = vmatpush3.msra.mxu0 %v3628_v26 }
 0x247   : > { %3014 = vmatprep.subr.mxu1 %v3624_v25  ;;  %3092 = vmatprep.subr.mxu0 %v3624_v25 }
 0x248   : > { %3015 = vmatpush3.msra.mxu1 %v3624_v25  ;;  %3093 = vmatpush3.msra.mxu0 %v3624_v25 }
 0x249   : > { %3016 = vmatprep.subr.mxu1 %v3620_v23  ;;  %3094 = vmatprep.subr.mxu0 %v3620_v23 }
 0x24a   : > { %3017 = vmatpush3.msra.mxu1 %v3620_v23  ;;  %3095 = vmatpush3.msra.mxu0 %v3620_v23 }
 0x24b   : > { %3018 = vmatprep.subr.mxu1 %v3616_v22  ;;  %3096 = vmatprep.subr.mxu0 %v3616_v22 }
 0x24c   : > { %3019 = vmatpush3.msra.mxu1 %v3616_v22  ;;  %3097 = vmatpush3.msra.mxu0 %v3616_v22 }
 0x24d   : > { %3026 = vmatprep.subr.msk.mxu1 %vm915_vm15, %v3640_v32  ;;  %3110 = vmatprep.subr.msk.mxu0 %vm915_vm15, %v3640_v32 }
 0x24e   : > { %3021 = vmatmul.mubr.msk.f32.vlgmr.msra.gmra.mxu1 %vm902_vm13, %v899_v34  ;;  %3099 = vmatmul.mubr.msk.f32.vlgmr.msra.gmra.mxu0 %vm902_vm13, %v2705_v1 }
 0x24f   : > { %3027 = vmatpush3.msk.msra.mxu1 %vm915_vm15, %v3640_v32  ;;  %3111 = vmatpush3.msk.msra.mxu0 %vm915_vm15, %v3640_v32 }
 0x250   : > { %3028 = vmatprep.subr.mxu1 %v3636_v3  ;;  %3112 = vmatprep.subr.mxu0 %v3636_v3 }
 0x251   : > { %3029 = vmatpush3.msra.mxu1 %v3636_v3  ;;  %3113 = vmatpush3.msra.mxu0 %v3636_v3 }
 0x252   : > { %3030 = vmatprep.subr.mxu1 %v3632_v28  ;;  %3114 = vmatprep.subr.mxu0 %v3632_v28 }
 0x253   : > { %3031 = vmatpush3.msra.mxu1 %v3632_v28  ;;  %3115 = vmatpush3.msra.mxu0 %v3632_v28 }
 0x254   : > { %3032 = vmatprep.subr.mxu1 %v3628_v26  ;;  %3116 = vmatprep.subr.mxu0 %v3628_v26 }
 0x255   : > { %3033 = vmatpush3.msra.mxu1 %v3628_v26  ;;  %3117 = vmatpush3.msra.mxu0 %v3628_v26 }
 0x256   : > { %3034 = vmatprep.subr.mxu1 %v3624_v25  ;;  %3118 = vmatprep.subr.mxu0 %v3624_v25 }
 0x257   : > { %3023 = vmatprep.mubr.msk.f32.mxu1 %vm902_vm13, %v900_v35  ;;  %3035 = vmatpush3.msra.mxu1 %v3624_v25 }
 0x258   : > { %3119 = vmatpush3.msra.mxu0 %v3624_v25  ;;  %3024 = vmatmul.mubr.msk.f32.gmra.mxu1 %vm902_vm13, %v901_v36 }
 0x259   : > { %3036 = vmatprep.subr.mxu1 %v3620_v23  ;;  %3101 = vmatprep.mubr.msk.f32.mxu0 %vm902_vm13, %v2706_v37 }
 0x25a   : > { %3120 = vmatprep.subr.mxu0 %v3620_v23  ;;  %3037 = vmatpush3.msra.mxu1 %v3620_v23 }
 0x25b   : > { %3102 = vmatmul.mubr.msk.f32.gmra.mxu0 %vm902_vm13, %v2707_v38  ;;  %3038 = vmatprep.subr.mxu1 %v3616_v22 }
 0x25c   : > { %3121 = vmatpush3.msra.mxu0 %v3620_v23  ;;  %3039 = vmatpush3.msra.mxu1 %v3616_v22 }
 0x25d   : > { %3122 = vmatprep.subr.mxu0 %v3616_v22  ;;  %3040 = vmatprep.mubr.msk.f32.mxu1 %vm902_vm13, %v2676_v42  ;;  %v2726_v42 = vld [vmem:[%s4053_s4 + $0x40] sm:$0xff] }
 0x25e   : > { %3123 = vmatpush3.msra.mxu0 %v3616_v22  ;;  %3041 = vmatmul.mubr.msk.f32.vlgmr.msra.gmra.mxu1 %vm902_vm13, %v2677_v43  ;;  %v2727_v43 = vld [vmem:[%s4053_s4 + $0x48] sm:$0xff] }
 0x25f   : > { %3124 = vmatprep.mubr.msk.f32.mxu0 %vm902_vm13, %v2717_v45  ;;  %3156 = vmatprep.subr.bf16.mxu0 %v1835_v44 }
 0x260   : > { %3125 = vmatmul.mubr.msk.f32.vlgmr.msra.gmra.mxu0 %vm902_vm13, %v2718_v46  ;;  %3043 = vmatprep.mubr.msk.f32.mxu1 %vm902_vm13, %v2678_v47  ;;  %v1668_v47 = vpack.c.bf16 %v2727_v43, %v2726_v42 }
 0x261   : > { %3157 = vmatpush3.bf16.msra.mxu0 %v1835_v44  ;;  %3046 = vmatprep.subr.bf16.mxu1 %v1116_v52 }
 0x262   : > { %3162 = vmatprep.subr.msk.mxu0 %vm915_vm15, %v3640_v32  ;;  %3044 = vmatmul.mubr.msk.f32.gmra.mxu1 %vm902_vm13, %v2679_v48 }
 0x263   : > { %3047 = vmatpush3.bf16.msra.mxu1 %v1116_v52  ;;  %3127 = vmatprep.mubr.msk.f32.mxu0 %vm902_vm13, %v2719_v56  ;;  %v2730_v56 = vld [vmem:[%s4057_s8 + $0xa0] sm:$0xff] }
 0x264   : > { %3052 = vmatprep.subr.bf16.mxu1 %v1008_v55  ;;  %3128 = vmatmul.mubr.msk.f32.gmra.mxu0 %vm902_vm13, %v2720_v58  ;;  %v2752_v58 = vld [vmem:[%s4053_s4 + $0x60] sm:$0xff] }
 0x30e   : > { %v3022_v59 = vpop.f32.mrf.mxu1  ;;  %v3100_v34 = vpop.f32.mrf.mxu0 }
 0x310   : > { %v985_v60 = vpop.f32.mrf.mxu1  ;;  %v1477_v1 = vpop.f32.mrf.mxu0 }
 0x311   : > { %v1004_v31 = vpack.c.bf16 %v3022_v59, %v985_v60  ;;  %v1496_v48 = vpack.c.bf16 %v3100_v34, %v1477_v1  ;;  %v2753_v59 = vld [vmem:[%s4053_s4 + $0x68] sm:$0xff]  ;;  %v2743_v1 = vld [vmem:[%s4057_s8 + $0xc0] sm:$0xff] }
 0x312   : > { %v2002_v60 = vpack.c.bf16 %v2753_v59, %v2752_v58  ;;  %v2756_v58 = vld [vmem:[%s4057_s8 + $0xe0] sm:$0xff]  ;;  %v2757_v59 = vld [vmem:[%s4057_s8 + $0xe8] sm:$0xff] }
 0x318   : > { %v3025_v61 = vpop.f32.mrf.mxu1 }
 0x31a   : > { %v995_v62 = vpop.f32.mrf.mxu1 }
 0x31b   : > { %v1005_v41 = vpack.c.bf16 %v3025_v61, %v995_v62  ;;  %v3103_v35 = vpop.f32.mrf.mxu0  ;;  %v2731_v61 = vld [vmem:[%s4057_s8 + $0xa8] sm:$0xff]  ;;  %v2732_v62 = vld [vmem:[%s4057_s8 + $0xb0] sm:$0xff] }
 0x31d   : > { %v1487_v39 = vpop.f32.mrf.mxu0 }
 0x31e   : > { %v3042_v63 = vpop.f32.mrf.mxu1  ;;  %v1497_v52 = vpack.c.bf16 %v3103_v35, %v1487_v39  ;;  %v2765_v35 = vld [vmem:[%s4053_s4 + $0x70] sm:$0xff] }
 0x31f   : > { %v2745_v39 = vld [vmem:[%s4057_s8 + $0xd0] sm:$0xff] }
 0x320   : > { %v1092_v57 = vpop.f32.mrf.mxu1  ;;  %v3126_v46 = vpop.f32.mrf.mxu0 }
 0x321   : > { %v1111_v0 = vpack.c.bf16 %v3042_v63, %v1092_v57  ;;  %v2733_v63 = vld [vmem:[%s4057_s8 + $0xb8] sm:$0x1] }
 0x322   : > { %v3045_v2 = vpop.f32.mrf.mxu1  ;;  %v1644_v50 = vpop.f32.mrf.mxu0 }
 0x323   : > { %3048 = vmatprep.mubr.msk.bf16.mxu1 %vm889_vm1, %v1111_v0  ;;  %v1663_v51 = vpack.c.bf16 %v3126_v46, %v1644_v50 }
 0x324   : > { %v1102_v49 = vpop.f32.mrf.mxu1  ;;  %v3129_v53 = vpop.f32.mrf.mxu0 }
 0x325   : > { %v1112_v5 = vpack.c.bf16 %v3045_v2, %v1102_v49 }
 0x326   : > { %v1654_v54 = vpop.f32.mrf.mxu0 }
 0x327   : > { %3049 = vmatmul.mubr.msk.bf16.vlgmr.msra.gmra.mxu1 %vm889_vm1, %v1112_v5 }
 0x328   : > { %3053 = vmatpush3.bf16.msra.mxu1 %v1008_v55  ;;  %3054 = vmatprep.mubr.msk.bf16.mxu1 %vm889_vm1, %v1004_v31  ;;  %v1664_v55 = vpack.c.bf16 %v3129_v53, %v1654_v54 }
 0x329   : > { %3058 = vmatprep.subr.msk.mxu1 %vm915_vm15, %v3640_v32 }
 0x32f   : > { %3055 = vmatmul.mubr.msk.bf16.vlgmr.msra.gmra.mxu1 %vm889_vm1, %v1005_v41 }
 0x330   : > { %3059 = vmatpush3.msk.msra.mxu1 %vm915_vm15, %v3640_v32  ;;  %3072 = vmatprep.mubr.msk.f32.mxu1 %vm902_vm13, %v2691_v7 }
 0x331   : > { %3060 = vmatprep.subr.mxu1 %v3636_v3 }
 0x332   : > { %3061 = vmatpush3.msra.mxu1 %v3636_v3 }
 0x333   : > { %3062 = vmatprep.subr.mxu1 %v3632_v28 }
 0x334   : > { %3063 = vmatpush3.msra.mxu1 %v3632_v28 }
 0x335   : > { %3064 = vmatprep.subr.mxu1 %v3628_v26 }
 0x336   : > { %3065 = vmatpush3.msra.mxu1 %v3628_v26 }
 0x337   : > { %3066 = vmatprep.subr.mxu1 %v3624_v25 }
 0x338   : > { %3067 = vmatpush3.msra.mxu1 %v3624_v25 }
 0x339   : > { %3068 = vmatprep.subr.mxu1 %v3620_v23 }
 0x33a   : > { %3069 = vmatpush3.msra.mxu1 %v3620_v23 }
 0x33b   : > { %3070 = vmatprep.subr.mxu1 %v3616_v22 }
 0x33c   : > { %3071 = vmatpush3.msra.mxu1 %v3616_v22 }
 0x33d   : > { %3073 = vmatmul.mubr.msk.f32.vlgmr.msra.gmra.mxu1 %vm902_vm13, %v2692_v9  ;;  %3078 = vmatprep.subr.bf16.mxu1 %v1334_v15 }
 0x33e   : > { %3075 = vmatprep.mubr.msk.f32.mxu1 %vm902_vm13, %v2693_v11  ;;  %3079 = vmatpush3.bf16.msra.mxu1 %v1334_v15 }
 0x33f   : > { %3104 = vmatprep.subr.bf16.mxu1 %v1501_v17 }
 0x341   : > { %3076 = vmatmul.mubr.msk.f32.gmra.mxu1 %vm902_vm13, %v2694_v13 }
 0x3e7   : > { %v3050_v18 = vpop.f32.mrf.mxu1 }
 0x3e9   : > { %v1157_v19 = vpop.f32.mrf.mxu1 }
 0x3eb   : > { %v3051_v10 = vpop.f32.mrf.mxu1 }
 0x3ed   : > { %v1160_v20 = vpop.f32.mrf.mxu1 }
 0x3ef   : > { %v3056_v21 = vpop.f32.mrf.mxu1 }
 0x3f0   : > { %v3831_v8 = vadd.f32 %v3056_v21, %v3050_v18 }
 0x3f1   : > { %v1212_v24 = vpop.f32.mrf.mxu1 }
 0x3f2   : > { %v3833_v6 = vadd.f32 %v1212_v24, %v1157_v19 }
 0x3f3   : > { %v3057_v27 = vpop.f32.mrf.mxu1 }
 0x3f4   : > { %v3835_v29 = vadd.f32 %v3057_v27, %v3051_v10 }
 0x3f5   : > { %v1215_v30 = vpop.f32.mrf.mxu1 }
 0x3f6   : > { %v3837_v33 = vadd.f32 %v1215_v30, %v1160_v20 }
 0x3fd   : > { %v3074_v36 = vpop.f32.mrf.mxu1 }
 0x3ff   : > { %v1310_v37 = vpop.f32.mrf.mxu1 }
 0x400   : > { %v1329_v38 = vpack.c.bf16 %v3074_v36, %v1310_v37  ;;  %v2766_v36 = vld [vmem:[%s4053_s4 + $0x78] sm:$0xff] }
 0x401   : > { %v3077_v40 = vpop.f32.mrf.mxu1  ;;  %v2169_v37 = vpack.c.bf16 %v2766_v36, %v2765_v35  ;;  %v2782_v35 = vld [vmem:[%s4054_s5] ss:$0 sm:$0xff] }
 0x402   : > { %3080 = vmatprep.mubr.msk.bf16.mxu1 %vm889_vm1, %v1329_v38  ;;  %v2744_v38 = vld [vmem:[%s4057_s8 + $0xc8] sm:$0xff] }
 0x403   : > { %v1320_v44 = vpop.f32.mrf.mxu1 }
 0x404   : > { %v1330_v45 = vpack.c.bf16 %v3077_v40, %v1320_v44  ;;  %v2746_v40 = vld [vmem:[%s4057_s8 + $0xd8] sm:$0x1] }
 0x406   : > { %3081 = vmatmul.mubr.msk.bf16.vlgmr.msra.gmra.mxu1 %vm889_vm1, %v1330_v45 }
 0x407   : > { %3105 = vmatpush3.bf16.msra.mxu1 %v1501_v17  ;;  %3106 = vmatprep.mubr.msk.bf16.mxu1 %vm889_vm1, %v1496_v48 }
 0x408   : > { %3130 = vmatprep.subr.bf16.mxu1 %v1668_v47 }
 0x40e   : > { %3107 = vmatmul.mubr.msk.bf16.vlgmr.msra.gmra.mxu1 %vm889_vm1, %v1497_v52 }
 0x40f   : > { %3131 = vmatpush3.bf16.msra.mxu1 %v1668_v47  ;;  %3132 = vmatprep.mubr.msk.bf16.mxu1 %vm889_vm1, %v1663_v51 }
 0x410   : > { %3136 = vmatprep.subr.msk.mxu1 %vm915_vm15, %v3640_v32 }
 0x416   : > { %3133 = vmatmul.mubr.msk.bf16.vlgmr.msra.gmra.mxu1 %vm889_vm1, %v1664_v55 }
 0x417   : > { %3137 = vmatpush3.msk.msra.mxu1 %vm915_vm15, %v3640_v32  ;;  %3150 = vmatprep.mubr.msk.f32.mxu1 %vm902_vm13, %v2730_v56 }
 0x418   : > { %3138 = vmatprep.subr.mxu1 %v3636_v3 }
 0x419   : > { %3139 = vmatpush3.msra.mxu1 %v3636_v3 }
 0x41a   : > { %3140 = vmatprep.subr.mxu1 %v3632_v28 }
 0x41b   : > { %3141 = vmatpush3.msra.mxu1 %v3632_v28 }
 0x41c   : > { %3142 = vmatprep.subr.mxu1 %v3628_v26 }
 0x41d   : > { %3143 = vmatpush3.msra.mxu1 %v3628_v26 }
 0x41e   : > { %3144 = vmatprep.subr.mxu1 %v3624_v25 }
 0x41f   : > { %3145 = vmatpush3.msra.mxu1 %v3624_v25 }
 0x420   : > { %3146 = vmatprep.subr.mxu1 %v3620_v23 }
 0x421   : > { %3147 = vmatpush3.msra.mxu1 %v3620_v23 }
 0x422   : > { %3148 = vmatprep.subr.mxu1 %v3616_v22 }
 0x423   : > { %3149 = vmatpush3.msra.mxu1 %v3616_v22 }
 0x424   : > { %3151 = vmatmul.mubr.msk.f32.vlgmr.msra.gmra.mxu1 %vm902_vm13, %v2731_v61  ;;  %3182 = vmatprep.subr.bf16.mxu1 %v2002_v60  ;;  %v2759_v61 = vld [vmem:[%s4057_s8 + $0xf8] sm:$0x1] }
 0x425   : > { %3183 = vmatpush3.bf16.msra.mxu1 %v2002_v60  ;;  %3153 = vmatprep.mubr.msk.f32.mxu1 %vm902_vm13, %v2732_v62  ;;  %v2758_v60 = vld [vmem:[%s4057_s8 + $0xf0] sm:$0xff] }
 0x426   : > { %3188 = vmatprep.subr.msk.mxu1 %vm915_vm15, %v3640_v32 }
 0x428   : > { %3154 = vmatmul.mubr.msk.f32.gmra.mxu1 %vm902_vm13, %v2733_v63 }
 0x4c6   : > { %v3082_v57 = vpop.f32.mrf.mxu1 }
 0x4c7   : > { %v1392_v0 = vadd.f32 %v3082_v57, %v3831_v8 }
 0x4c8   : > { %v1375_v2 = vpop.f32.mrf.mxu1 }
 0x4c9   : > { %v1390_v49 = vadd.f32 %v1375_v2, %v3833_v6 }
 0x4ca   : > { %v3083_v5 = vpop.f32.mrf.mxu1 }
 0x4cb   : > { %v1393_v31 = vadd.f32 %v3083_v5, %v3835_v29 }
 0x4cc   : > { %v1378_v41 = vpop.f32.mrf.mxu1 }
 0x4cd   : > { %v1391_v7 = vadd.f32 %v1378_v41, %v3837_v33 }
 0x4ce   : > { %v3108_v9 = vpop.f32.mrf.mxu1 }
 0x4cf   : > { %v1559_v11 = vadd.f32 %v3108_v9, %v1392_v0 }
 0x4d0   : > { %v1542_v13 = vpop.f32.mrf.mxu1 }
 0x4d1   : > { %v1557_v4 = vadd.f32 %v1542_v13, %v1390_v49 }
 0x4d2   : > { %v3109_v14 = vpop.f32.mrf.mxu1 }
 0x4d3   : > { %v1560_v15 = vadd.f32 %v3109_v14, %v1393_v31  ;;  %v2769_v14 = vld [vmem:[%s4057_s8 + $0x100] sm:$0xff] }
 0x4d4   : > { %v1545_v16 = vpop.f32.mrf.mxu1 }
 0x4d5   : > { %v1558_v12 = vadd.f32 %v1545_v16, %v1391_v7 }
 0x4d6   : > { %v3134_v17 = vpop.f32.mrf.mxu1 }
 0x4d7   : > { %v1726_v18 = vadd.f32 %v3134_v17, %v1559_v11 }
 0x4d8   : > { %v1709_v19 = vpop.f32.mrf.mxu1 }
 0x4d9   : > { %v1724_v10 = vadd.f32 %v1709_v19, %v1557_v4 }
 0x4da   : > { %v3135_v20 = vpop.f32.mrf.mxu1 }
 0x4db   : > { %v1727_v21 = vadd.f32 %v3135_v20, %v1560_v15 }
 0x4dc   : > { %v1712_v8 = vpop.f32.mrf.mxu1 }
 0x4dd   : > { %v1725_v24 = vadd.f32 %v1712_v8, %v1558_v12 }
 0x4e4   : > { %v3152_v6 = vpop.f32.mrf.mxu1 }
 0x4e6   : > { %v1811_v27 = vpop.f32.mrf.mxu1 }
 0x4e7   : > { %v1830_v29 = vpack.c.bf16 %v3152_v6, %v1811_v27 }
 0x4e8   : > { %v3155_v30 = vpop.f32.mrf.mxu1 }
 0x4e9   : > { %3158 = vmatprep.mubr.msk.bf16.mxu0 %vm889_vm1, %v1830_v29 }
 0x4ea   : > { %v1821_v33 = vpop.f32.mrf.mxu1 }
 0x4eb   : > { %v1831_v34 = vpack.c.bf16 %v3155_v30, %v1821_v33 }
 0x4ed   : > { %3159 = vmatmul.mubr.msk.bf16.vlgmr.msra.gmra.mxu0 %vm889_vm1, %v1831_v34 }
 0x4ee   : > { %3163 = vmatpush3.msk.msra.mxu0 %vm915_vm15, %v3640_v32  ;;  %3176 = vmatprep.mubr.msk.f32.mxu0 %vm902_vm13, %v2743_v1 }
 0x4ef   : > { %3164 = vmatprep.subr.mxu0 %v3636_v3 }
 0x4f0   : > { %3165 = vmatpush3.msra.mxu0 %v3636_v3 }
 0x4f1   : > { %3166 = vmatprep.subr.mxu0 %v3632_v28 }
 0x4f2   : > { %3167 = vmatpush3.msra.mxu0 %v3632_v28 }
 0x4f3   : > { %3168 = vmatprep.subr.mxu0 %v3628_v26 }
 0x4f4   : > { %3169 = vmatpush3.msra.mxu0 %v3628_v26 }
 0x4f5   : > { %3170 = vmatprep.subr.mxu0 %v3624_v25 }
 0x4f6   : > { %3171 = vmatpush3.msra.mxu0 %v3624_v25 }
 0x4f7   : > { %3172 = vmatprep.subr.mxu0 %v3620_v23 }
 0x4f8   : > { %3173 = vmatpush3.msra.mxu0 %v3620_v23 }
 0x4f9   : > { %3174 = vmatprep.subr.mxu0 %v3616_v22 }
 0x4fa   : > { %3175 = vmatpush3.msra.mxu0 %v3616_v22 }
 0x4fb   : > { %3177 = vmatmul.mubr.msk.f32.vlgmr.msra.gmra.mxu0 %vm902_vm13, %v2744_v38  ;;  %3208 = vmatprep.subr.bf16.mxu0 %v2169_v37 }
 0x4fc   : > { %3209 = vmatpush3.bf16.msra.mxu0 %v2169_v37  ;;  %3179 = vmatprep.mubr.msk.f32.mxu0 %vm902_vm13, %v2745_v39 }
 0x4fd   : > { %3214 = vmatprep.subr.msk.mxu0 %vm915_vm15, %v3640_v32 }
 0x4ff   : > { %3180 = vmatmul.mubr.msk.f32.gmra.mxu0 %vm902_vm13, %v2746_v40 }
 0x5ad   : > { %v3160_v42 = vpop.f32.mrf.mxu0 }
 0x5ae   : > { %v1893_v43 = vadd.f32 %v3160_v42, %v1726_v18 }
 0x5af   : > { %v1876_v44 = vpop.f32.mrf.mxu0 }
 0x5b0   : > { %v1891_v45 = vadd.f32 %v1876_v44, %v1724_v10 }
 0x5b1   : > { %v3161_v46 = vpop.f32.mrf.mxu0 }
 0x5b2   : > { %v1894_v47 = vadd.f32 %v3161_v46, %v1727_v21 }
 0x5b3   : > { %v1879_v48 = vpop.f32.mrf.mxu0 }
 0x5b4   : > { %v1892_v50 = vadd.f32 %v1879_v48, %v1725_v24 }
 0x5bb   : > { %v3178_v51 = vpop.f32.mrf.mxu0 }
 0x5bd   : > { %v1978_v52 = vpop.f32.mrf.mxu0 }
 0x5be   : > { %v1997_v53 = vpack.c.bf16 %v3178_v51, %v1978_v52 }
 0x5bf   : > { %v3181_v54 = vpop.f32.mrf.mxu0 }
 0x5c0   : > { %3184 = vmatprep.mubr.msk.bf16.mxu1 %vm889_vm1, %v1997_v53 }
 0x5c1   : > { %v1988_v55 = vpop.f32.mrf.mxu0 }
 0x5c2   : > { %v1998_v56 = vpack.c.bf16 %v3181_v54, %v1988_v55 }
 0x5c4   : > { %3185 = vmatmul.mubr.msk.bf16.vlgmr.msra.gmra.mxu1 %vm889_vm1, %v1998_v56 }
 0x5c5   : > { %3189 = vmatpush3.msk.msra.mxu1 %vm915_vm15, %v3640_v32  ;;  %3202 = vmatprep.mubr.msk.f32.mxu1 %vm902_vm13, %v2756_v58 }
 0x5c6   : > { %3190 = vmatprep.subr.mxu1 %v3636_v3 }
 0x5c7   : > { %3191 = vmatpush3.msra.mxu1 %v3636_v3 }
 0x5c8   : > { %3192 = vmatprep.subr.mxu1 %v3632_v28 }
 0x5c9   : > { %3193 = vmatpush3.msra.mxu1 %v3632_v28 }
 0x5ca   : > { %3194 = vmatprep.subr.mxu1 %v3628_v26 }
 0x5cb   : > { %3195 = vmatpush3.msra.mxu1 %v3628_v26 }
 0x5cc   : > { %3196 = vmatprep.subr.mxu1 %v3624_v25 }
 0x5cd   : > { %3197 = vmatpush3.msra.mxu1 %v3624_v25 }
 0x5ce   : > { %3198 = vmatprep.subr.mxu1 %v3620_v23 }
 0x5cf   : > { %3199 = vmatpush3.msra.mxu1 %v3620_v23 }
 0x5d0   : > { %3200 = vmatprep.subr.mxu1 %v3616_v22 }
 0x5d1   : > { %3201 = vmatpush3.msra.mxu1 %v3616_v22 }
 0x5d2   : > { %3203 = vmatmul.mubr.msk.f32.vlgmr.msra.gmra.mxu1 %vm902_vm13, %v2757_v59 }
 0x5d3   : > { %3205 = vmatprep.mubr.msk.f32.mxu1 %vm902_vm13, %v2758_v60 }
 0x5d6   : > { %3206 = vmatmul.mubr.msk.f32.gmra.mxu1 %vm902_vm13, %v2759_v61 }
 0x684   : > { %v3186_v62 = vpop.f32.mrf.mxu1 }
 0x685   : > { %v2060_v63 = vadd.f32 %v3186_v62, %v1893_v43 }
 0x686   : > { %v2043_v57 = vpop.f32.mrf.mxu1 }
 0x687   : > { %v2058_v0 = vadd.f32 %v2043_v57, %v1891_v45 }
 0x688   : > { %v3187_v2 = vpop.f32.mrf.mxu1 }
 0x689   : > { %v2061_v49 = vadd.f32 %v3187_v2, %v1894_v47 }
 0x68a   : > { %v2046_v5 = vpop.f32.mrf.mxu1 }
 0x68b   : > { %v2059_v31 = vadd.f32 %v2046_v5, %v1892_v50 }
 0x692   : > { %v3204_v41 = vpop.f32.mrf.mxu1 }
 0x694   : > { %v2145_v7 = vpop.f32.mrf.mxu1 }
 0x695   : > { %v2164_v9 = vpack.c.bf16 %v3204_v41, %v2145_v7 }
 0x696   : > { %v3207_v11 = vpop.f32.mrf.mxu1 }
 0x697   : > { %3210 = vmatprep.mubr.msk.bf16.mxu0 %vm889_vm1, %v2164_v9 }
 0x698   : > { %v2155_v13 = vpop.f32.mrf.mxu1 }
 0x699   : > { %v2165_v4 = vpack.c.bf16 %v3207_v11, %v2155_v13 }
 0x69b   : > { %3211 = vmatmul.mubr.msk.bf16.vlgmr.msra.gmra.mxu0 %vm889_vm1, %v2165_v4 }
 0x69c   : > { %3215 = vmatpush3.msk.msra.mxu0 %vm915_vm15, %v3640_v32  ;;  %3228 = vmatprep.mubr.msk.f32.mxu0 %vm902_vm13, %v2769_v14 }
 0x69d   : > { %3216 = vmatprep.subr.mxu0 %v3636_v3 }
 0x69e   : > { %3217 = vmatpush3.msra.mxu0 %v3636_v3  ;;  %v2770_v3 = vld [vmem:[%s4057_s8 + $0x108] sm:$0xff] }
 0x69f   : > { %3218 = vmatprep.subr.mxu0 %v3632_v28 }
 0x6a0   : > { %3219 = vmatpush3.msra.mxu0 %v3632_v28  ;;  %v2771_v28 = vld [vmem:[%s4057_s8 + $0x110] sm:$0xff] }
 0x6a1   : > { %3220 = vmatprep.subr.mxu0 %v3628_v26 }
 0x6a2   : > { %3221 = vmatpush3.msra.mxu0 %v3628_v26  ;;  %v2779_v26 = vld [vmem:[%s4053_s4 + $0x88] sm:$0xff] }
 0x6a3   : > { %3222 = vmatprep.subr.mxu0 %v3624_v25 }
 0x6a4   : > { %3223 = vmatpush3.msra.mxu0 %v3624_v25  ;;  %v2778_v25 = vld [vmem:[%s4053_s4 + $0x80] sm:$0xff] }
 0x6a5   : > { %3224 = vmatprep.subr.mxu0 %v3620_v23  ;;  %v2336_v32 = vpack.c.bf16 %v2779_v26, %v2778_v25 }
 0x6a6   : > { %3225 = vmatpush3.msra.mxu0 %v3620_v23  ;;  %v2772_v23 = vld [vmem:[%s4057_s8 + $0x118] sm:$0x1] }
 0x6a7   : > { %3226 = vmatprep.subr.mxu0 %v3616_v22  ;;  %3234 = vmatprep.subr.bf16.mxu1 %v2336_v32 }
 0x6a8   : > { %3227 = vmatpush3.msra.mxu0 %v3616_v22  ;;  %3235 = vmatpush3.bf16.msra.mxu1 %v2336_v32 }
 0x6a9   : > { %3229 = vmatmul.mubr.msk.f32.vlgmr.msra.gmra.mxu0 %vm902_vm13, %v2770_v3 }
 0x6aa   : > { %3231 = vmatprep.mubr.msk.f32.mxu0 %vm902_vm13, %v2771_v28 }
 0x6ad   : > { %3232 = vmatmul.mubr.msk.f32.gmra.mxu0 %vm902_vm13, %v2772_v23 }
 0x75b   : > { %v3212_v22 = vpop.f32.mrf.mxu0 }
 0x75c   : > { %v2227_v15 = vadd.f32 %v3212_v22, %v2060_v63 }
 0x75d   : > { %v2210_v16 = vpop.f32.mrf.mxu0 }
 0x75e   : > { %v2225_v12 = vadd.f32 %v2210_v16, %v2058_v0 }
 0x75f   : > { %v3213_v17 = vpop.f32.mrf.mxu0 }
 0x760   : > { %v2228_v18 = vadd.f32 %v3213_v17, %v2061_v49 }
 0x761   : > { %v2213_v19 = vpop.f32.mrf.mxu0 }
 0x762   : > { %v2226_v10 = vadd.f32 %v2213_v19, %v2059_v31  ;;  %v2784_v19 = vld [vmem:[%s4056_s7] ss:$0 sm:$0xff] }
 0x769   : > { %v3230_v20 = vpop.f32.mrf.mxu0 }
 0x76b   : > { %v2312_v21 = vpop.f32.mrf.mxu0 }
 0x76c   : > { %v2331_v8 = vpack.c.bf16 %v3230_v20, %v2312_v21 }
 0x76d   : > { %v3233_v24 = vpop.f32.mrf.mxu0 }
 0x76e   : > { %3236 = vmatprep.mubr.msk.bf16.mxu1 %vm889_vm1, %v2331_v8 }
 0x76f   : > { %v2322_v6 = vpop.f32.mrf.mxu0 }
 0x770   : > { %v2332_v27 = vpack.c.bf16 %v3233_v24, %v2322_v6 }
 0x772   : > { %3237 = vmatmul.mubr.msk.bf16.vlgmr.msra.gmra.mxu1 %vm889_vm1, %v2332_v27 }
 0x832   : > { %v3238_v29 = vpop.f32.mrf.mxu1 }
 0x833   : > { %v2394_v1 = vadd.f32 %v3238_v29, %v2227_v15  ;;  %v2783_v15 = vld [vmem:[%s4055_s6] ss:$0 sm:$0xff] }
 0x834   : > { %v2377_v30 = vpop.f32.mrf.mxu1 }
 0x835   : > { %v2392_v33 = vadd.f32 %v2377_v30, %v2225_v12  ;;  %v2405_v40 = vadd.f32 %v2782_v35, %v2394_v1  ;;  %v2785_v30 = vld [vmem:[%s4058_s9] ss:$0 sm:$0xff] }
 0x836   : > { %v3239_v34 = vpop.f32.mrf.mxu1 }
 0x837   : > { %v2403_v37 = vadd.f32 %v2782_v35, %v2392_v33  ;;  %v2395_v38 = vadd.f32 %v3239_v34, %v2228_v18  ;;  %v2411_v47 = vsel %vm2407_vm0, %v2405_v40, 0.0 }
 0x838   : > { %v2380_v36 = vpop.f32.mrf.mxu1 }
 0x839   : > { %v2393_v39 = vadd.f32 %v2380_v36, %v2226_v10  ;;  %v2408_v43 = vsel %vm2407_vm0, %v2403_v37, 0.0  ;;  %v2406_v44 = vadd.f32 %v2782_v35, %v2395_v38 }
 0x83b   : > { %v2404_v42 = vadd.f32 %v2782_v35, %v2393_v39  ;;  %v2414_v50 = vsel %vm2413_vm2, %v2406_v44, 0.0 }
 0x83d   : > { %v2409_v45 = vsel %vm2407_vm0, %v2404_v42, 0.0 }
 0x83e   : > { %v2410_v46 = vadd.f32 %v2409_v45, %v2408_v43 }
 0x840   : > { %v2412_v48 = vadd.f32 %v2411_v47, %v2410_v46 }
 0x842   : > { %v2415_v51 = vadd.f32 %v2414_v50, %v2412_v48  ;;  %v2786_v50 = vld [vmem:[#allocation2] ss:$0 sm:$0xff] }
 0x844   : > { %v2416_v52 = vrot.slane %v2415_v51, 4 }
 0x846   : > { %v2417_v53 = vadd.f32 %v2416_v52, %v2415_v51 }
 0x848   : > { %v2418_v54 = vrot.slane %v2417_v53, 2 }
 0x84a   : > { %v2419_v55 = vadd.f32 %v2418_v54, %v2417_v53 }
 0x84c   : > { %v2420_v56 = vrot.slane %v2419_v55, 1 }
 0x84e   : > { %v2421_v58 = vadd.f32 %v2420_v56, %v2419_v55 }
 0x850   : > { %v2423_v59 = vmul.f32 0.04, %v2421_v58 }
 0x852   : > { %v2424_v60 = vsub.f32 %v2403_v37, %v2423_v59  ;;  %v2425_v61 = vsub.f32 %v2404_v42, %v2423_v59  ;;  %v2426_v62 = vsub.f32 %v2405_v40, %v2423_v59  ;;  %v2427_v63 = vsub.f32 %v2406_v44, %v2423_v59 }
 0x854   : > { %v2428_v57 = vmul.f32 %v2424_v60, %v2424_v60  ;;  %v2429_v0 = vmul.f32 %v2425_v61, %v2425_v61  ;;  %v2430_v2 = vmul.f32 %v2426_v62, %v2426_v62  ;;  %v2431_v49 = vmul.f32 %v2427_v63, %v2427_v63 }
 0x856   : > { %v2432_v5 = vsel %vm2407_vm0, %v2428_v57, 0.0  ;;  %v2433_v31 = vsel %vm2407_vm0, %v2429_v0, 0.0  ;;  %v2435_v7 = vsel %vm2407_vm0, %v2430_v2, 0.0  ;;  %v2437_v11 = vsel %vm2413_vm2, %v2431_v49, 0.0 }
 0x857   : > { %v2434_v41 = vadd.f32 %v2433_v31, %v2432_v5 }
 0x859   : > { %v2436_v9 = vadd.f32 %v2435_v7, %v2434_v41 }
 0x85b   : > { %v2438_v13 = vadd.f32 %v2437_v11, %v2436_v9 }
 0x85d   : > { %v2439_v4 = vrot.slane %v2438_v13, 4 }
 0x85f   : > { %v2440_v14 = vadd.f32 %v2439_v4, %v2438_v13 }
 0x861   : > { %v2441_v3 = vrot.slane %v2440_v14, 2 }
 0x863   : > { %v2442_v28 = vadd.f32 %v2441_v3, %v2440_v14 }
 0x865   : > { %v2443_v23 = vrot.slane %v2442_v28, 1 }
 0x867   : > { %v2444_v25 = vadd.f32 %v2443_v23, %v2442_v28 }
 0x869   : > { %v2445_v26 = vmul.f32 0.04, %v2444_v25 }
 0x86b   : > { %v2446_v32 = vadd.f32 1e-05, %v2445_v26 }
 0x86d   : > { %3252 = vrsqrt.f32 %v2446_v32 }
 0x87a   : > { %v3253_v22 = vpop.eup %3252 }
 0x87b   : > { %v2449_v16 = vmul.f32 %v3253_v22, %v2425_v61  ;;  %v2450_v12 = vmul.f32 %v3253_v22, %v2426_v62  ;;  %v2448_v17 = vmul.f32 %v3253_v22, %v2424_v60  ;;  %v2451_v18 = vmul.f32 %v3253_v22, %v2427_v63 }
 0x87d   : > { %v2460_v10 = vmul.f32 %v2783_v15, %v2449_v16  ;;  %v2461_v20 = vmul.f32 %v2783_v15, %v2450_v12  ;;  %v2459_v21 = vmul.f32 %v2783_v15, %v2448_v17  ;;  %v2462_v8 = vmul.f32 %v2783_v15, %v2451_v18 }
 0x87f   : > { %v2472_v24 = vadd.f32 %v2784_v19, %v2461_v20  ;;  %v2470_v6 = vadd.f32 %v2784_v19, %v2459_v21  ;;  %v2473_v27 = vadd.f32 %v2784_v19, %v2462_v8  ;;  %v2471_v29 = vadd.f32 %v2784_v19, %v2460_v10 }
 0x881   : > { %vm2476_vm3 = vcmp.gt.f32.partialorder %v2472_v24, 0.0  ;;  %v2480_v33 = vmul.f32 0.2, %v2472_v24  ;;  %vm2474_vm4 = vcmp.gt.f32.partialorder %v2470_v6, 0.0  ;;  %v2478_v34 = vmul.f32 0.2, %v2470_v6 }
 0x882   : > { %vm2477_vm5 = vcmp.gt.f32.partialorder %v2473_v27, 0.0  ;;  %v2481_v1 = vmul.f32 0.2, %v2473_v27  ;;  %vm2475_vm6 = vcmp.gt.f32.partialorder %v2471_v29, 0.0  ;;  %v2479_v35 = vmul.f32 0.2, %v2471_v29 }
 0x883   : > { %v2484_v36 = vsel %vm2476_vm3, %v2472_v24, %v2480_v33  ;;  %v2482_v37 = vsel %vm2474_vm4, %v2470_v6, %v2478_v34 }
 0x884   : > { %v2499_v38 = vmul.f32 %v2785_v30, %v2484_v36  ;;  %2488 = vst.msk [vmem:[%s462_s24 + $0x10] sm:$0xff] %vm2407_vm0, %v2484_v36  ;;  %v2497_v39 = vmul.f32 %v2785_v30, %v2482_v37  ;;  %2486 = vst.msk [vmem:[%s462_s24] sm:$0xff] %vm2407_vm0, %v2482_v37  ;;  %v2485_v40 = vsel %vm2477_vm5, %v2473_v27, %v2481_v1 }
 0x885   : > { %v2483_v42 = vsel %vm2475_vm6, %v2471_v29, %v2479_v35  ;;  %2489 = vst.msk [vmem:[%s462_s24 + $0x18] sm:$0x1] %vm2413_vm2, %v2485_v40  ;;  %v2500_v45 = vmul.f32 %v2785_v30, %v2485_v40 }
 0x886   : > { %2487 = vst.msk [vmem:[%s462_s24 + $0x8] sm:$0xff] %vm2407_vm0, %v2483_v42  ;;  %v2507_v43 = vsel %vm2407_vm0, %v2499_v38, 0.0  ;;  %v2501_v44 = vsel %vm2407_vm0, %v2497_v39, 0.0  ;;  %v2498_v46 = vmul.f32 %v2785_v30, %v2483_v42 }
 0x887   : > { %2508 = vadd.xlane.f32.xlu1 %v2507_v43  ;;  %2502 = vadd.xlane.f32.xlu0 %v2501_v44  ;;  %v2510_v47 = vsel %vm2413_vm2, %v2500_v45, 0.0 }
 0x888   : > { %v2504_v48 = vsel %vm2407_vm0, %v2498_v46, 0.0 }
 0x88b   : > { %2511 = vadd.xlane.f32.xlu1 %v2510_v47  ;;  %2505 = vadd.xlane.f32.xlu0 %v2504_v48 }
 0x910   : > { %v2509_v51 = vpop.xlane.xlu1 %2508  ;;  %v2503_v52 = vpop.xlane.xlu0 %2502 }
 0x911   : > { %v2522_v53 = vadd.f32 %v2786_v50, %v2509_v51  ;;  %v2520_v54 = vadd.f32 %v2786_v50, %v2503_v52 }
 0x913   : > { %2527 = vst.msk [vmem:[%s467_s29 + $0x10] sm:$0xff] %vm2524_vm7, %v2522_v53  ;;  %2525 = vst.msk [vmem:[%s467_s29] sm:$0xff] %vm2524_vm7, %v2520_v54 }
 0x914   : > { %v2512_v55 = vpop.xlane.xlu1 %2511  ;;  %v2506_v56 = vpop.xlane.xlu0 %2505 }
 0x915   : > { %v2523_v58 = vadd.f32 %v2786_v50, %v2512_v55  ;;  %v2521_v59 = vadd.f32 %v2786_v50, %v2506_v56 }
 0x917   : > { %2529 = vst.msk [vmem:[%s467_s29 + $0x18] sm:$0x1] %vm2528_vm8, %v2523_v58 }
 0x918   : > { %2526 = vst.msk [vmem:[%s467_s29 + $0x8] sm:$0xff] %vm2524_vm7, %v2521_v59 }
 0x919 PF: > { %s26_s27 = sadd.s32 1, %s3260_s27  }
 0x91a   : > { %p23_p4 = scmp.ge.s32.totalorder %s26_s27, 4  }
 0x91c   :  { %25 = sbr.rel (!%p23_p4) target bundleno = 3 (0x3), region = 134 }

</bundles_post_ra>
